<compile_context>
chip_gen: v7x
topology: tpu7x:2x2x1
jax: 0.10.0
libtpu: 0.0.40
codegen_flags: <defaults>
</compile_context>

<pallas_src>
import functools

import jax
import jax.numpy as jnp
from jax.experimental import pallas as pl
from jax.experimental.pallas import tpu as pltpu


def _vmem_limit_bytes():
    # ~75% of physical VMEM: v5e/v6e (128 MiB) -> ~96 MiB, v7x (64 MiB) -> 48 MiB.
    try:
        info = pltpu.get_tpu_info()
        cap = getattr(info, "vmem_capacity_bytes", None)
        if cap:
            return int(cap) * 3 // 4
    except Exception:
        pass
    return 48 * 1024 * 1024


_VMEM_LIMIT = _vmem_limit_bytes()


# ----------------------------------------------------------------------------
# In-kernel helpers (all f32 elementwise)
# ----------------------------------------------------------------------------
def _layernorm(x, g, b, eps=1e-5):
    # x: (..., C); g, b: (1, C)   (PyTorch nn.LayerNorm default eps=1e-5)
    mu = jnp.mean(x, axis=-1, keepdims=True)
    var = jnp.mean((x - mu) ** 2, axis=-1, keepdims=True)
    return (x - mu) * jax.lax.rsqrt(var + eps) * g + b


def _erf(x):
    # float32-accurate polynomial erf (Abramowitz & Stegun 7.1.26, max err
    # ~1.5e-7) -> matches torch's exact GELU to f32 precision using only ops
    # guaranteed to lower on the TPU VPU/EUP.
    ax = jnp.abs(x)
    t = 1.0 / (1.0 + 0.3275911 * ax)
    poly = ((((1.061405429 * t - 1.453152027) * t + 1.421413741) * t
             - 0.284496736) * t + 0.254829592) * t
    y = 1.0 - poly * jnp.exp(-ax * ax)
    return jnp.where(x >= 0, y, -y)


def _gelu_exact(x):
    # nn.GELU() default (approximate='none'):  0.5 * x * (1 + erf(x / sqrt(2)))
    return 0.5 * x * (1.0 + _erf(x * 0.7071067811865476))


# ----------------------------------------------------------------------------
# Kernel 1: the whole transformer stack.  Grid = (batch, layer); per-layer
# weights are streamed (prefetched) over the layer axis while the residual
# stream stays resident in the revisited (1,T,C) output block.
# ----------------------------------------------------------------------------
_STACK_PARAM_ORDER = ('ln1_g', 'ln1_b', 'wqkv', 'bqkv', 'wproj', 'bproj',
                      'ln2_g', 'ln2_b', 'wfc', 'bfc', 'wfcp', 'bfcp')


def transformer_stack_kernel(n_head,
                             x_ref, bias_ref,
                             ln1_g, ln1_b, wqkv, bqkv, wproj, bproj,
                             ln2_g, ln2_b, wfc, bfc, wfcp, bfcp,
                             out_ref):
    l = pl.program_id(1)

    @pl.when(l == 0)
    def _():
        # Load the embedded tokens once per batch row; afterwards the residual
        # stream lives in this VMEM-resident output block across all layers.
        out_ref[0] = x_ref[0]

    x = out_ref[0]                                   # (T, C) f32
    T, C = x.shape
    H = n_head
    D = C // H
    scale = 1.0 / (D ** 0.5)

    # ---- attention (pre-LN), fused QKV projection (single N=3C matmul) ----
    h1 = _layernorm(x, ln1_g[0], ln1_b[0])                          # (T, C) f32
    qkv = jnp.dot(h1.astype(jnp.bfloat16), wqkv[0],
                  preferred_element_type=jnp.float32) + bqkv[0]     # (T, 3C) f32

    # split heads via static lane slices (cheaper than scaling (T,T) scores:
    # scale is folded into q)
    q = jnp.stack([qkv[:, h * D:(h + 1) * D] for h in range(H)], axis=0) * scale
    k = jnp.stack([qkv[:, C + h * D:C + (h + 1) * D] for h in range(H)], axis=0)
    v = jnp.stack([qkv[:, 2 * C + h * D:2 * C + (h + 1) * D] for h in range(H)],
                  axis=0)                                           # (H, T, D)

    s = jax.lax.dot_general(q.astype(jnp.bfloat16), k.astype(jnp.bfloat16),
                            (((2,), (2,)), ((0,), (0,))),
                            preferred_element_type=jnp.float32)     # (H, T, T)
    s = s + bias_ref[...][None]                                     # causal bias (precomputed)

    m = jnp.max(s, axis=-1, keepdims=True)
    e = jnp.exp(s - m)
    p = e * pl.reciprocal(jnp.sum(e, axis=-1, keepdims=True), approx=True)
    # TODO(synk): for long sequences (T >= ~512 on v7x, ~1k on v5e/v6e) switch
    # this full (H,T,T) softmax to a flash-style online softmax over KV tiles
    # to bound attention VMEM.

    y = jax.lax.dot_general(p.astype(jnp.bfloat16), v.astype(jnp.bfloat16),
                            (((2,), (1,)), ((0,), (0,))),
                            preferred_element_type=jnp.float32)     # (H, T, D)

    # merge heads along lanes, then one K=C output projection (no (H,T,C)
    # intermediate, no VPU head-sum)
    y_cat = jnp.concatenate([y[h] for h in range(H)], axis=-1)      # (T, C)
    att = jnp.dot(y_cat.astype(jnp.bfloat16), wproj[0],
                  preferred_element_type=jnp.float32) + bproj[0]
    x1 = x + att                                                    # residual (dropout = identity)

    # ---- MLP (pre-LN) ----
    h2 = _layernorm(x1, ln2_g[0], ln2_b[0])
    f = jnp.dot(h2.astype(jnp.bfloat16), wfc[0],
                preferred_element_type=jnp.float32) + bfc[0]
    f = _gelu_exact(f)
    mlp = jnp.dot(f.astype(jnp.bfloat16), wfcp[0],
                  preferred_element_type=jnp.float32) + bfcp[0]
    out_ref[0] = x1 + mlp                                           # residual (dropout = identity)


def transformer_stack(x_emb, bias, stacked, n_head):
    B, T, C = x_emb.shape
    L = stacked['wqkv'].shape[0]
    p_args = [stacked[key] for key in _STACK_PARAM_ORDER]

    in_specs = [
        pl.BlockSpec((1, T, C), lambda b, l: (b, 0, 0)),     # fetched once per b
        pl.BlockSpec((T, T), lambda b, l: (0, 0)),           # causal bias (constant)
    ]
    for p in p_args:
        in_specs.append(
            pl.BlockSpec((1,) + p.shape[1:],
                         lambda b, l, nz=p.ndim - 1: (l,) + (0,) * nz))

    # TODO(synk): for small-batch weight-HBM-bound decode, swap the grid to
    # (L, B) with a batch-resident output block so weights are fetched once,
    # and add a head/q-tile parallel axis so both v7x TensorCores are fed.
    return pl.pallas_call(
        functools.partial(transformer_stack_kernel, n_head),
        out_shape=jax.ShapeDtypeStruct((B, T, C), x_emb.dtype),
        grid=(B, L),
        in_specs=in_specs,
        out_specs=pl.BlockSpec((1, T, C), lambda b, l: (b, 0, 0)),
        compiler_params=pltpu.CompilerParams(
            dimension_semantics=("parallel", "arbitrary"),
            vmem_limit_bytes=_VMEM_LIMIT),
    )(x_emb, bias, *p_args)


# ----------------------------------------------------------------------------
# Kernel 2: final LayerNorm (last position only) + tied lm_head, tiled over a
# padded vocab dimension (lane-dense 1024/2048-wide tiles, no wte.T in HBM).
# ----------------------------------------------------------------------------
def lm_head_kernel(x_ref, lnf_g, lnf_b, wte_ref, out_ref):
    h = _layernorm(x_ref[...], lnf_g[...], lnf_b[...])              # (B, C) f32
    # contract h's C against the (TILE_V, C) embedding tile's C -> (B, TILE_V)
    out_ref[...] = jax.lax.dot_general(
        h.astype(jnp.bfloat16), wte_ref[...],
        (((1,), (1,)), ((), ())),
        preferred_element_type=jnp.float32)


def _round_up(x, m):
    return ((x + m - 1) // m) * m


def _pick_vocab_tile(v_padded):
    for t in (2048, 1024, 512, 256, 128):
        if v_padded % t == 0:
            return t
    return v_padded          # unreachable: vocab is padded to a multiple of 1024


def lm_head(x_last, lnf_g, lnf_b, wte_padded):
    B, C = x_last.shape
    Vp = wte_padded.shape[0]
    tile_v = _pick_vocab_tile(Vp)
    return pl.pallas_call(
        lm_head_kernel,
        out_shape=jax.ShapeDtypeStruct((B, Vp), jnp.float32),
        grid=(Vp // tile_v,),
        in_specs=[
            pl.BlockSpec((B, C), lambda j: (0, 0)),
            pl.BlockSpec((1, C), lambda j: (0, 0)),
            pl.BlockSpec((1, C), lambda j: (0, 0)),
            pl.BlockSpec((tile_v, C), lambda j: (j, 0)),
        ],
        out_specs=pl.BlockSpec((B, tile_v), lambda j: (0, j)),
        compiler_params=pltpu.CompilerParams(
            dimension_semantics=("parallel",),
            vmem_limit_bytes=_VMEM_LIMIT),
    )(x_last, lnf_g, lnf_b, wte_padded)


# ----------------------------------------------------------------------------
# Parameters (deterministic init mirroring LLM._init_weights: normal(0, 0.02)
# for Linear / Embedding weights, zeros for biases; LayerNorm = ones / zeros).
# Matmul weights stored bf16; biases / LN params / pos-emb stay f32.  The tied
# token embedding is padded to a multiple of 1024 rows for lane-dense lm_head
# tiles (extra rows are zero and sliced off the logits).
# ----------------------------------------------------------------------------
def init_params(key, *, vocab, block_size, n_layer, n_embd, n_head):
    del n_head  # head split happens inside the kernel
    C = n_embd
    std = 0.02
    vpad = _round_up(vocab, 1024)
    k_emb, k_pos, k_layers = jax.random.split(key, 3)
    wte = jax.random.normal(k_emb, (vocab, C), jnp.float32) * std
    wte = jnp.pad(wte, ((0, vpad - vocab), (0, 0)))
    params = {
        'wte': wte.astype(jnp.bfloat16),
        'wpe': jax.random.normal(k_pos, (block_size, C), jnp.float32) * std,
        'lnf_g': jnp.ones((1, C), jnp.float32),
        'lnf_b': jnp.zeros((1, C), jnp.float32),
    }
    layers = []
    for lk in jax.random.split(k_layers, n_layer):
        k1, k2, k3, k4 = jax.random.split(lk, 4)
        layers.append({
            'ln1_g': jnp.ones((1, C), jnp.float32),
            'ln1_b': jnp.zeros((1, C), jnp.float32),
            'wqkv': (jax.random.normal(k1, (C, 3 * C), jnp.float32) * std
                     ).astype(jnp.bfloat16),
            'bqkv': jnp.zeros((1, 3 * C), jnp.float32),
            'wproj': (jax.random.normal(k2, (C, C), jnp.float32) * std
                      ).astype(jnp.bfloat16),
            'bproj': jnp.zeros((1, C), jnp.float32),
            'ln2_g': jnp.ones((1, C), jnp.float32),
            'ln2_b': jnp.zeros((1, C), jnp.float32),
            'wfc': (jax.random.normal(k3, (C, 4 * C), jnp.float32) * std
                    ).astype(jnp.bfloat16),
            'bfc': jnp.zeros((1, 4 * C), jnp.float32),
            'wfcp': (jax.random.normal(k4, (4 * C, C), jnp.float32) * std
                     ).astype(jnp.bfloat16),
            'bfcp': jnp.zeros((1, C), jnp.float32),
        })
    # Stack per-layer params with a leading L dim: the whole transformer runs
    # as one pallas_call with the layer index as a grid axis.
    params['stack'] = {k: jnp.stack([lyr[k] for lyr in layers], axis=0)
                       for k in _STACK_PARAM_ORDER}
    return params


# ----------------------------------------------------------------------------
# Full forward (equivalent to LLM.forward(idx, targets=None) in eval mode).
# ----------------------------------------------------------------------------
@functools.partial(jax.jit, static_argnums=(2, 3))
def llm_forward(idx, params, vocab, n_head):
    b, t = idx.shape
    tok = jnp.take(params['wte'], idx, axis=0).astype(jnp.float32)  # (B,T,C) gather (glue)
    pos = params['wpe'][:t]                                         # (T, C)
    x = tok + pos[None]                                             # drop (eval) = identity

    # causal additive bias built once per forward, reused by every layer/batch
    row = jax.lax.broadcasted_iota(jnp.int32, (t, t), 0)
    col = jax.lax.broadcasted_iota(jnp.int32, (t, t), 1)
    bias = jnp.where(col <= row, 0.0, -1e30).astype(jnp.float32)

    x = transformer_stack(x, bias, params['stack'], n_head)
    x_last = x[:, -1, :]                                            # LayerNorm is per-position,
    logits = lm_head(x_last, params['lnf_g'],                       # so ln_f + lm_head on last pos
                     params['lnf_b'], params['wte'])
    return logits[:, None, :vocab]                                  # (B, 1, vocab); loss = None


# TODO(synk): training-mode dropout and the cross-entropy (targets != None)
# branch are not implemented; this covers the inference forward path.

if __name__ == "__main__":
    # Small shapes consistent with the module (scaled-down config).
    B, T = 2, 8
    VOCAB, BLOCK_SIZE, N_EMBD, N_HEAD, N_LAYER = 512, 16, 32, 4, 2

    key = jax.random.PRNGKey(0)
    k_params, k_idx = jax.random.split(key)
    params = init_params(k_params, vocab=VOCAB, block_size=BLOCK_SIZE,
                         n_layer=N_LAYER, n_embd=N_EMBD, n_head=N_HEAD)
    idx = jax.random.randint(k_idx, (B, T), 0, VOCAB, dtype=jnp.int32)

    logits = llm_forward(idx, params, VOCAB, N_HEAD)
    logits = jax.block_until_ready(logits)
    assert logits.shape == (B, 1, VOCAB), logits.shape
    assert bool(jnp.all(jnp.isfinite(logits)))
    print("KERNEL_OK")
</pallas_src>

<mosaic_0001>
module attributes {stable_mosaic.version = 11 : i64} {
  func.func @transformer_stack_kernel(%arg0: i32, %arg1: i32, %arg2: memref<1x8x32xf32, #tpu.memory_space<vmem>>, %arg3: memref<8x8xf32, #tpu.memory_space<vmem>>, %arg4: memref<1x1x32xf32, #tpu.memory_space<vmem>>, %arg5: memref<1x1x32xf32, #tpu.memory_space<vmem>>, %arg6: memref<1x32x96xbf16, #tpu.memory_space<vmem>>, %arg7: memref<1x1x96xf32, #tpu.memory_space<vmem>>, %arg8: memref<1x32x32xbf16, #tpu.memory_space<vmem>>, %arg9: memref<1x1x32xf32, #tpu.memory_space<vmem>>, %arg10: memref<1x1x32xf32, #tpu.memory_space<vmem>>, %arg11: memref<1x1x32xf32, #tpu.memory_space<vmem>>, %arg12: memref<1x32x128xbf16, #tpu.memory_space<vmem>>, %arg13: memref<1x1x128xf32, #tpu.memory_space<vmem>>, %arg14: memref<1x128x32xbf16, #tpu.memory_space<vmem>>, %arg15: memref<1x1x32xf32, #tpu.memory_space<vmem>>, %arg16: memref<1x8x32xf32, #tpu.memory_space<vmem>>) attributes {dimension_semantics = [#tpu.dimension_semantics<parallel>, #tpu.dimension_semantics<arbitrary>], iteration_bounds = array<i64: 2, 2>, scalar_prefetch = 0 : i64, scratch_operands = 0 : i64, tpu.core_type = #tpu.core_type<tc>, window_params = [{transform_indices = @transform_0, window_bounds = array<i64: 1, 8, 32>}, {pipeline_mode = #tpu.pipeline_mode<synchronous>, transform_indices = @transform_1, window_bounds = array<i64: 8, 8>}, {transform_indices = @transform_2, window_bounds = array<i64: 1, 1, 32>}, {transform_indices = @transform_3, window_bounds = array<i64: 1, 1, 32>}, {transform_indices = @transform_4, window_bounds = array<i64: 1, 32, 96>}, {transform_indices = @transform_5, window_bounds = array<i64: 1, 1, 96>}, {transform_indices = @transform_6, window_bounds = array<i64: 1, 32, 32>}, {transform_indices = @transform_7, window_bounds = array<i64: 1, 1, 32>}, {transform_indices = @transform_8, window_bounds = array<i64: 1, 1, 32>}, {transform_indices = @transform_9, window_bounds = array<i64: 1, 1, 32>}, {transform_indices = @transform_10, window_bounds = array<i64: 1, 32, 128>}, {transform_indices = @transform_11, window_bounds = array<i64: 1, 1, 128>}, {transform_indices = @transform_12, window_bounds = array<i64: 1, 128, 32>}, {transform_indices = @transform_13, window_bounds = array<i64: 1, 1, 32>}, {transform_indices = @transform_14, window_bounds = array<i64: 1, 8, 32>}]} {
    %c0_i32 = arith.constant 0 : i32
    %0 = arith.cmpi eq, %arg1, %c0_i32 : i32
    %1 = arith.extui %0 : i1 to i32
    %c0_i32_0 = arith.constant 0 : i32
    %2 = arith.cmpi ne, %1, %c0_i32_0 : i32
    scf.if %2 {
      %c0_77 = arith.constant 0 : index
      %c0_78 = arith.constant 0 : index
      %c0_79 = arith.constant 0 : index
      %192 = vector.load %arg2[%c0_77, %c0_78, %c0_79] : memref<1x8x32xf32, #tpu.memory_space<vmem>>, vector<1x8x32xf32>
      %193 = vector.shape_cast %192 : vector<1x8x32xf32> to vector<8x32xf32>
      %c0_80 = arith.constant 0 : index
      %c0_81 = arith.constant 0 : index
      %c0_82 = arith.constant 0 : index
      %194 = vector.load %arg16[%c0_80, %c0_81, %c0_82] : memref<1x8x32xf32, #tpu.memory_space<vmem>>, vector<1x8x32xf32>
      %195 = vector.shape_cast %194 : vector<1x8x32xf32> to vector<8x32xf32>
      %196 = vector.shape_cast %193 : vector<8x32xf32> to vector<1x8x32xf32>
      tpu.vector_store %arg16[%c0_80, %c0_81, %c0_82], %196 {strides = array<i32>} : memref<1x8x32xf32, #tpu.memory_space<vmem>>, vector<1x8x32xf32>,
    } else {
    }
    %c0 = arith.constant 0 : index
    %c0_1 = arith.constant 0 : index
    %c0_2 = arith.constant 0 : index
    %3 = vector.load %arg16[%c0, %c0_1, %c0_2] : memref<1x8x32xf32, #tpu.memory_space<vmem>>, vector<1x8x32xf32>
    %4 = vector.shape_cast %3 : vector<1x8x32xf32> to vector<8x32xf32>
    %c0_3 = arith.constant 0 : index
    %c0_4 = arith.constant 0 : index
    %c0_5 = arith.constant 0 : index
    %5 = vector.load %arg4[%c0_3, %c0_4, %c0_5] : memref<1x1x32xf32, #tpu.memory_space<vmem>>, vector<1x1x32xf32>
    %6 = vector.shape_cast %5 : vector<1x1x32xf32> to vector<1x32xf32>
    %c0_6 = arith.constant 0 : index
    %c0_7 = arith.constant 0 : index
    %c0_8 = arith.constant 0 : index
    %7 = vector.load %arg5[%c0_6, %c0_7, %c0_8] : memref<1x1x32xf32, #tpu.memory_space<vmem>>, vector<1x1x32xf32>
    %8 = vector.shape_cast %7 : vector<1x1x32xf32> to vector<1x32xf32>
    %cst = arith.constant dense<0.000000e+00> : vector<8xf32>
    %9 = vector.multi_reduction <add>, %4, %cst [1] : vector<8x32xf32> to vector<8xf32>
    %10 = vector.shape_cast %9 : vector<8xf32> to vector<8x1xf32>
    %cst_9 = arith.constant 3.200000e+01 : f32
    %11 = vector.broadcast %cst_9 : f32 to vector<8x1xf32>
    %12 = arith.divf %10, %11 : vector<8x1xf32>
    %13 = vector.broadcast %12 : vector<8x1xf32> to vector<8x32xf32>
    %14 = arith.subf %4, %13 : vector<8x32xf32>
    %15 = arith.mulf %14, %14 : vector<8x32xf32>
    %cst_10 = arith.constant dense<0.000000e+00> : vector<8xf32>
    %16 = vector.multi_reduction <add>, %15, %cst_10 [1] : vector<8x32xf32> to vector<8xf32>
    %17 = vector.shape_cast %16 : vector<8xf32> to vector<8x1xf32>
    %cst_11 = arith.constant 3.200000e+01 : f32
    %18 = vector.broadcast %cst_11 : f32 to vector<8x1xf32>
    %19 = arith.divf %17, %18 : vector<8x1xf32>
    %20 = vector.broadcast %12 : vector<8x1xf32> to vector<8x32xf32>
    %21 = arith.subf %4, %20 : vector<8x32xf32>
    %cst_12 = arith.constant 9.99999974E-6 : f32
    %22 = vector.broadcast %cst_12 : f32 to vector<8x1xf32>
    %23 = arith.addf %19, %22 : vector<8x1xf32>
    %24 = math.rsqrt %23 : vector<8x1xf32>
    %25 = vector.broadcast %24 : vector<8x1xf32> to vector<8x32xf32>
    %26 = arith.mulf %21, %25 : vector<8x32xf32>
    %27 = vector.broadcast %6 : vector<1x32xf32> to vector<8x32xf32>
    %28 = arith.mulf %26, %27 : vector<8x32xf32>
    %29 = vector.broadcast %8 : vector<1x32xf32> to vector<8x32xf32>
    %30 = arith.addf %28, %29 : vector<8x32xf32>
    %31 = arith.truncf %30 : vector<8x32xf32> to vector<8x32xbf16>
    %c0_13 = arith.constant 0 : index
    %c0_14 = arith.constant 0 : index
    %c0_15 = arith.constant 0 : index
    %32 = vector.load %arg6[%c0_13, %c0_14, %c0_15] : memref<1x32x96xbf16, #tpu.memory_space<vmem>>, vector<1x32x96xbf16>
    %33 = vector.shape_cast %32 : vector<1x32x96xbf16> to vector<32x96xbf16>
    %cst_16 = arith.constant dense<0.000000e+00> : vector<8x96xf32>
    %34 = tpu.matmul %31, %33, %cst_16 {dimension_numbers = #tpu.dot_dimension_numbers<[1], [0], [0], [1], [0, 0, 1, 1], [], []>} : vector<8x32xbf16>, vector<32x96xbf16>, vector<8x96xf32> -> vector<8x96xf32>
    %c0_17 = arith.constant 0 : index
    %c0_18 = arith.constant 0 : index
    %c0_19 = arith.constant 0 : index
    %35 = vector.load %arg7[%c0_17, %c0_18, %c0_19] : memref<1x1x96xf32, #tpu.memory_space<vmem>>, vector<1x1x96xf32>
    %36 = vector.shape_cast %35 : vector<1x1x96xf32> to vector<1x96xf32>
    %37 = vector.broadcast %36 : vector<1x96xf32> to vector<8x96xf32>
    %38 = arith.addf %34, %37 : vector<8x96xf32>
    %39 = vector.extract_strided_slice %38 {offsets = [0, 0], sizes = [8, 8], strides = [1, 1]} : vector<8x96xf32> to vector<8x8xf32>
    %40 = vector.extract_strided_slice %38 {offsets = [0, 8], sizes = [8, 8], strides = [1, 1]} : vector<8x96xf32> to vector<8x8xf32>
    %41 = vector.extract_strided_slice %38 {offsets = [0, 16], sizes = [8, 8], strides = [1, 1]} : vector<8x96xf32> to vector<8x8xf32>
    %42 = vector.extract_strided_slice %38 {offsets = [0, 24], sizes = [8, 8], strides = [1, 1]} : vector<8x96xf32> to vector<8x8xf32>
    %43 = vector.shape_cast %39 : vector<8x8xf32> to vector<1x8x8xf32>
    %44 = vector.shape_cast %40 : vector<8x8xf32> to vector<1x8x8xf32>
    %45 = vector.shape_cast %41 : vector<8x8xf32> to vector<1x8x8xf32>
    %46 = vector.shape_cast %42 : vector<8x8xf32> to vector<1x8x8xf32>
    %47 = tpu.concatenate %43, %44, %45, %46 in 0 : vector<1x8x8xf32>, vector<1x8x8xf32>, vector<1x8x8xf32>, vector<1x8x8xf32> -> vector<4x8x8xf32>
    %cst_20 = arith.constant 0.353553385 : f32
    %48 = vector.broadcast %cst_20 : f32 to vector<4x8x8xf32>
    %49 = arith.mulf %47, %48 : vector<4x8x8xf32>
    %50 = vector.extract_strided_slice %38 {offsets = [0, 32], sizes = [8, 8], strides = [1, 1]} : vector<8x96xf32> to vector<8x8xf32>
    %51 = vector.extract_strided_slice %38 {offsets = [0, 40], sizes = [8, 8], strides = [1, 1]} : vector<8x96xf32> to vector<8x8xf32>
    %52 = vector.extract_strided_slice %38 {offsets = [0, 48], sizes = [8, 8], strides = [1, 1]} : vector<8x96xf32> to vector<8x8xf32>
    %53 = vector.extract_strided_slice %38 {offsets = [0, 56], sizes = [8, 8], strides = [1, 1]} : vector<8x96xf32> to vector<8x8xf32>
    %54 = vector.shape_cast %50 : vector<8x8xf32> to vector<1x8x8xf32>
    %55 = vector.shape_cast %51 : vector<8x8xf32> to vector<1x8x8xf32>
    %56 = vector.shape_cast %52 : vector<8x8xf32> to vector<1x8x8xf32>
    %57 = vector.shape_cast %53 : vector<8x8xf32> to vector<1x8x8xf32>
    %58 = tpu.concatenate %54, %55, %56, %57 in 0 : vector<1x8x8xf32>, vector<1x8x8xf32>, vector<1x8x8xf32>, vector<1x8x8xf32> -> vector<4x8x8xf32>
    %59 = vector.extract_strided_slice %38 {offsets = [0, 64], sizes = [8, 8], strides = [1, 1]} : vector<8x96xf32> to vector<8x8xf32>
    %60 = vector.extract_strided_slice %38 {offsets = [0, 72], sizes = [8, 8], strides = [1, 1]} : vector<8x96xf32> to vector<8x8xf32>
    %61 = vector.extract_strided_slice %38 {offsets = [0, 80], sizes = [8, 8], strides = [1, 1]} : vector<8x96xf32> to vector<8x8xf32>
    %62 = vector.extract_strided_slice %38 {offsets = [0, 88], sizes = [8, 8], strides = [1, 1]} : vector<8x96xf32> to vector<8x8xf32>
    %63 = vector.shape_cast %59 : vector<8x8xf32> to vector<1x8x8xf32>
    %64 = vector.shape_cast %60 : vector<8x8xf32> to vector<1x8x8xf32>
    %65 = vector.shape_cast %61 : vector<8x8xf32> to vector<1x8x8xf32>
    %66 = vector.shape_cast %62 : vector<8x8xf32> to vector<1x8x8xf32>
    %67 = tpu.concatenate %63, %64, %65, %66 in 0 : vector<1x8x8xf32>, vector<1x8x8xf32>, vector<1x8x8xf32>, vector<1x8x8xf32> -> vector<4x8x8xf32>
    %68 = arith.truncf %49 : vector<4x8x8xf32> to vector<4x8x8xbf16>
    %69 = arith.truncf %58 : vector<4x8x8xf32> to vector<4x8x8xbf16>
    %cst_21 = arith.constant dense<0.000000e+00> : vector<4x8x8xf32>
    %70 = tpu.matmul %68, %69, %cst_21 {dimension_numbers = #tpu.dot_dimension_numbers<[2], [2], [1], [1], [0, 0, 0, 1, 1, 1], [0], [0]>} : vector<4x8x8xbf16>, vector<4x8x8xbf16>, vector<4x8x8xf32> -> vector<4x8x8xf32>
    %c0_22 = arith.constant 0 : index
    %c0_23 = arith.constant 0 : index
    %71 = vector.load %arg3[%c0_22, %c0_23] : memref<8x8xf32, #tpu.memory_space<vmem>>, vector<8x8xf32>
    %72 = vector.shape_cast %71 : vector<8x8xf32> to vector<1x8x8xf32>
    %73 = vector.broadcast %72 : vector<1x8x8xf32> to vector<4x8x8xf32>
    %74 = arith.addf %70, %73 : vector<4x8x8xf32>
    %cst_24 = arith.constant dense<0xFF800000> : vector<4x8xf32>
    %75 = vector.multi_reduction <maximumf>, %74, %cst_24 [2] : vector<4x8x8xf32> to vector<4x8xf32>
    %76 = vector.shape_cast %75 : vector<4x8xf32> to vector<4x8x1xf32>
    %77 = vector.broadcast %76 : vector<4x8x1xf32> to vector<4x8x8xf32>
    %78 = arith.subf %74, %77 : vector<4x8x8xf32>
    %79 = math.exp %78 : vector<4x8x8xf32>
    %cst_25 = arith.constant dense<0.000000e+00> : vector<4x8xf32>
    %80 = vector.multi_reduction <add>, %79, %cst_25 [2] : vector<4x8x8xf32> to vector<4x8xf32>
    %81 = vector.shape_cast %80 : vector<4x8xf32> to vector<4x8x1xf32>
    %82 = tpu.reciprocal %81 {approx = true} : vector<4x8x1xf32> -> vector<4x8x1xf32>
    %83 = vector.broadcast %82 : vector<4x8x1xf32> to vector<4x8x8xf32>
    %84 = arith.mulf %79, %83 : vector<4x8x8xf32>
    %85 = arith.truncf %84 : vector<4x8x8xf32> to vector<4x8x8xbf16>
    %86 = arith.truncf %67 : vector<4x8x8xf32> to vector<4x8x8xbf16>
    %cst_26 = arith.constant dense<0.000000e+00> : vector<4x8x8xf32>
    %87 = tpu.matmul %85, %86, %cst_26 {dimension_numbers = #tpu.dot_dimension_numbers<[2], [1], [1], [2], [0, 0, 0, 1, 1, 2], [0], [0]>} : vector<4x8x8xbf16>, vector<4x8x8xbf16>, vector<4x8x8xf32> -> vector<4x8x8xf32>
    %88 = vector.extract_strided_slice %87 {offsets = [0, 0, 0], sizes = [1, 8, 8], strides = [1, 1, 1]} : vector<4x8x8xf32> to vector<1x8x8xf32>
    %89 = vector.shape_cast %88 : vector<1x8x8xf32> to vector<8x8xf32>
    %90 = vector.extract_strided_slice %87 {offsets = [1, 0, 0], sizes = [1, 8, 8], strides = [1, 1, 1]} : vector<4x8x8xf32> to vector<1x8x8xf32>
    %91 = vector.shape_cast %90 : vector<1x8x8xf32> to vector<8x8xf32>
    %92 = vector.extract_strided_slice %87 {offsets = [2, 0, 0], sizes = [1, 8, 8], strides = [1, 1, 1]} : vector<4x8x8xf32> to vector<1x8x8xf32>
    %93 = vector.shape_cast %92 : vector<1x8x8xf32> to vector<8x8xf32>
    %94 = vector.extract_strided_slice %87 {offsets = [3, 0, 0], sizes = [1, 8, 8], strides = [1, 1, 1]} : vector<4x8x8xf32> to vector<1x8x8xf32>
    %95 = vector.shape_cast %94 : vector<1x8x8xf32> to vector<8x8xf32>
    %96 = tpu.concatenate %89, %91, %93, %95 in 1 : vector<8x8xf32>, vector<8x8xf32>, vector<8x8xf32>, vector<8x8xf32> -> vector<8x32xf32>
    %97 = arith.truncf %96 : vector<8x32xf32> to vector<8x32xbf16>
    %c0_27 = arith.constant 0 : index
    %c0_28 = arith.constant 0 : index
    %c0_29 = arith.constant 0 : index
    %98 = vector.load %arg8[%c0_27, %c0_28, %c0_29] : memref<1x32x32xbf16, #tpu.memory_space<vmem>>, vector<1x32x32xbf16>
    %99 = vector.shape_cast %98 : vector<1x32x32xbf16> to vector<32x32xbf16>
    %cst_30 = arith.constant dense<0.000000e+00> : vector<8x32xf32>
    %100 = tpu.matmul %97, %99, %cst_30 {dimension_numbers = #tpu.dot_dimension_numbers<[1], [0], [0], [1], [0, 0, 1, 1], [], []>} : vector<8x32xbf16>, vector<32x32xbf16>, vector<8x32xf32> -> vector<8x32xf32>
    %c0_31 = arith.constant 0 : index
    %c0_32 = arith.constant 0 : index
    %c0_33 = arith.constant 0 : index
    %101 = vector.load %arg9[%c0_31, %c0_32, %c0_33] : memref<1x1x32xf32, #tpu.memory_space<vmem>>, vector<1x1x32xf32>
    %102 = vector.shape_cast %101 : vector<1x1x32xf32> to vector<1x32xf32>
    %103 = vector.broadcast %102 : vector<1x32xf32> to vector<8x32xf32>
    %104 = arith.addf %100, %103 : vector<8x32xf32>
    %105 = arith.addf %4, %104 : vector<8x32xf32>
    %c0_34 = arith.constant 0 : index
    %c0_35 = arith.constant 0 : index
    %c0_36 = arith.constant 0 : index
    %106 = vector.load %arg10[%c0_34, %c0_35, %c0_36] : memref<1x1x32xf32, #tpu.memory_space<vmem>>, vector<1x1x32xf32>
    %107 = vector.shape_cast %106 : vector<1x1x32xf32> to vector<1x32xf32>
    %c0_37 = arith.constant 0 : index
    %c0_38 = arith.constant 0 : index
    %c0_39 = arith.constant 0 : index
    %108 = vector.load %arg11[%c0_37, %c0_38, %c0_39] : memref<1x1x32xf32, #tpu.memory_space<vmem>>, vector<1x1x32xf32>
    %109 = vector.shape_cast %108 : vector<1x1x32xf32> to vector<1x32xf32>
    %cst_40 = arith.constant dense<0.000000e+00> : vector<8xf32>
    %110 = vector.multi_reduction <add>, %105, %cst_40 [1] : vector<8x32xf32> to vector<8xf32>
    %111 = vector.shape_cast %110 : vector<8xf32> to vector<8x1xf32>
    %cst_41 = arith.constant 3.200000e+01 : f32
    %112 = vector.broadcast %cst_41 : f32 to vector<8x1xf32>
    %113 = arith.divf %111, %112 : vector<8x1xf32>
    %114 = vector.broadcast %113 : vector<8x1xf32> to vector<8x32xf32>
    %115 = arith.subf %105, %114 : vector<8x32xf32>
    %116 = arith.mulf %115, %115 : vector<8x32xf32>
    %cst_42 = arith.constant dense<0.000000e+00> : vector<8xf32>
    %117 = vector.multi_reduction <add>, %116, %cst_42 [1] : vector<8x32xf32> to vector<8xf32>
    %118 = vector.shape_cast %117 : vector<8xf32> to vector<8x1xf32>
    %cst_43 = arith.constant 3.200000e+01 : f32
    %119 = vector.broadcast %cst_43 : f32 to vector<8x1xf32>
    %120 = arith.divf %118, %119 : vector<8x1xf32>
    %121 = vector.broadcast %113 : vector<8x1xf32> to vector<8x32xf32>
    %122 = arith.subf %105, %121 : vector<8x32xf32>
    %cst_44 = arith.constant 9.99999974E-6 : f32
    %123 = vector.broadcast %cst_44 : f32 to vector<8x1xf32>
    %124 = arith.addf %120, %123 : vector<8x1xf32>
    %125 = math.rsqrt %124 : vector<8x1xf32>
    %126 = vector.broadcast %125 : vector<8x1xf32> to vector<8x32xf32>
    %127 = arith.mulf %122, %126 : vector<8x32xf32>
    %128 = vector.broadcast %107 : vector<1x32xf32> to vector<8x32xf32>
    %129 = arith.mulf %127, %128 : vector<8x32xf32>
    %130 = vector.broadcast %109 : vector<1x32xf32> to vector<8x32xf32>
    %131 = arith.addf %129, %130 : vector<8x32xf32>
    %132 = arith.truncf %131 : vector<8x32xf32> to vector<8x32xbf16>
    %c0_45 = arith.constant 0 : index
    %c0_46 = arith.constant 0 : index
    %c0_47 = arith.constant 0 : index
    %133 = vector.load %arg12[%c0_45, %c0_46, %c0_47] : memref<1x32x128xbf16, #tpu.memory_space<vmem>>, vector<1x32x128xbf16>
    %134 = vector.shape_cast %133 : vector<1x32x128xbf16> to vector<32x128xbf16>
    %cst_48 = arith.constant dense<0.000000e+00> : vector<8x128xf32>
    %135 = tpu.matmul %132, %134, %cst_48 {dimension_numbers = #tpu.dot_dimension_numbers<[1], [0], [0], [1], [0, 0, 1, 1], [], []>} : vector<8x32xbf16>, vector<32x128xbf16>, vector<8x128xf32> -> vector<8x128xf32>
    %c0_49 = arith.constant 0 : index
    %c0_50 = arith.constant 0 : index
    %c0_51 = arith.constant 0 : index
    %136 = vector.load %arg13[%c0_49, %c0_50, %c0_51] : memref<1x1x128xf32, #tpu.memory_space<vmem>>, vector<1x1x128xf32>
    %137 = vector.shape_cast %136 : vector<1x1x128xf32> to vector<1x128xf32>
    %138 = vector.broadcast %137 : vector<1x128xf32> to vector<8x128xf32>
    %139 = arith.addf %135, %138 : vector<8x128xf32>
    %cst_52 = arith.constant 5.000000e-01 : f32
    %140 = vector.broadcast %cst_52 : f32 to vector<8x128xf32>
    %141 = arith.mulf %140, %139 : vector<8x128xf32>
    %cst_53 = arith.constant 0.707106769 : f32
    %142 = vector.broadcast %cst_53 : f32 to vector<8x128xf32>
    %143 = arith.mulf %139, %142 : vector<8x128xf32>
    %144 = math.absf %143 : vector<8x128xf32>
    %cst_54 = arith.constant 0.327591091 : f32
    %145 = vector.broadcast %cst_54 : f32 to vector<8x128xf32>
    %146 = arith.mulf %145, %144 : vector<8x128xf32>
    %cst_55 = arith.constant 1.000000e+00 : f32
    %147 = vector.broadcast %cst_55 : f32 to vector<8x128xf32>
    %148 = arith.addf %147, %146 : vector<8x128xf32>
    %cst_56 = arith.constant 1.000000e+00 : f32
    %149 = vector.broadcast %cst_56 : f32 to vector<8x128xf32>
    %150 = arith.divf %149, %148 : vector<8x128xf32>
    %cst_57 = arith.constant 1.06140542 : f32
    %151 = vector.broadcast %cst_57 : f32 to vector<8x128xf32>
    %152 = arith.mulf %151, %150 : vector<8x128xf32>
    %cst_58 = arith.constant 1.45315206 : f32
    %153 = vector.broadcast %cst_58 : f32 to vector<8x128xf32>
    %154 = arith.subf %152, %153 : vector<8x128xf32>
    %155 = arith.mulf %154, %150 : vector<8x128xf32>
    %cst_59 = arith.constant 1.42141378 : f32
    %156 = vector.broadcast %cst_59 : f32 to vector<8x128xf32>
    %157 = arith.addf %155, %156 : vector<8x128xf32>
    %158 = arith.mulf %157, %150 : vector<8x128xf32>
    %cst_60 = arith.constant 0.284496725 : f32
    %159 = vector.broadcast %cst_60 : f32 to vector<8x128xf32>
    %160 = arith.subf %158, %159 : vector<8x128xf32>
    %161 = arith.mulf %160, %150 : vector<8x128xf32>
    %cst_61 = arith.constant 0.254829586 : f32
    %162 = vector.broadcast %cst_61 : f32 to vector<8x128xf32>
    %163 = arith.addf %161, %162 : vector<8x128xf32>
    %164 = arith.mulf %163, %150 : vector<8x128xf32>
    %cst_62 = arith.constant 0.000000e+00 : f32
    %165 = vector.broadcast %cst_62 : f32 to vector<8x128xf32>
    %166 = arith.subf %165, %144 : vector<8x128xf32>
    %167 = arith.mulf %166, %144 : vector<8x128xf32>
    %168 = math.exp %167 : vector<8x128xf32>
    %169 = arith.mulf %164, %168 : vector<8x128xf32>
    %cst_63 = arith.constant 1.000000e+00 : f32
    %170 = vector.broadcast %cst_63 : f32 to vector<8x128xf32>
    %171 = arith.subf %170, %169 : vector<8x128xf32>
    %cst_64 = arith.constant 0.000000e+00 : f32
    %172 = vector.broadcast %cst_64 : f32 to vector<8x128xf32>
    %173 = arith.cmpf oge, %143, %172 : vector<8x128xf32>
    %cst_65 = arith.constant 0.000000e+00 : f32
    %174 = vector.broadcast %cst_65 : f32 to vector<8x128xf32>
    %175 = arith.subf %174, %171 : vector<8x128xf32>
    %176 = arith.select %173, %171, %175 : vector<8x128xi1>, vector<8x128xf32>
    %cst_66 = arith.constant 1.000000e+00 : f32
    %177 = vector.broadcast %cst_66 : f32 to vector<8x128xf32>
    %178 = arith.addf %177, %176 : vector<8x128xf32>
    %179 = arith.mulf %141, %178 : vector<8x128xf32>
    %180 = arith.truncf %179 : vector<8x128xf32> to vector<8x128xbf16>
    %c0_67 = arith.constant 0 : index
    %c0_68 = arith.constant 0 : index
    %c0_69 = arith.constant 0 : index
    %181 = vector.load %arg14[%c0_67, %c0_68, %c0_69] : memref<1x128x32xbf16, #tpu.memory_space<vmem>>, vector<1x128x32xbf16>
    %182 = vector.shape_cast %181 : vector<1x128x32xbf16> to vector<128x32xbf16>
    %cst_70 = arith.constant dense<0.000000e+00> : vector<8x32xf32>
    %183 = tpu.matmul %180, %182, %cst_70 {dimension_numbers = #tpu.dot_dimension_numbers<[1], [0], [0], [1], [0, 0, 1, 1], [], []>} : vector<8x128xbf16>, vector<128x32xbf16>, vector<8x32xf32> -> vector<8x32xf32>
    %c0_71 = arith.constant 0 : index
    %c0_72 = arith.constant 0 : index
    %c0_73 = arith.constant 0 : index
    %184 = vector.load %arg15[%c0_71, %c0_72, %c0_73] : memref<1x1x32xf32, #tpu.memory_space<vmem>>, vector<1x1x32xf32>
    %185 = vector.shape_cast %184 : vector<1x1x32xf32> to vector<1x32xf32>
    %186 = vector.broadcast %185 : vector<1x32xf32> to vector<8x32xf32>
    %187 = arith.addf %183, %186 : vector<8x32xf32>
    %188 = arith.addf %105, %187 : vector<8x32xf32>
    %c0_74 = arith.constant 0 : index
    %c0_75 = arith.constant 0 : index
    %c0_76 = arith.constant 0 : index
    %189 = vector.load %arg16[%c0_74, %c0_75, %c0_76] : memref<1x8x32xf32, #tpu.memory_space<vmem>>, vector<1x8x32xf32>
    %190 = vector.shape_cast %189 : vector<1x8x32xf32> to vector<8x32xf32>
    %191 = vector.shape_cast %188 : vector<8x32xf32> to vector<1x8x32xf32>
    tpu.vector_store %arg16[%c0_74, %c0_75, %c0_76], %191 {strides = array<i32>} : memref<1x8x32xf32, #tpu.memory_space<vmem>>, vector<1x8x32xf32>,
    return
  }
  func.func @transform_0(%arg0: i32, %arg1: i32) -> (i32, i32, i32) {
    %c0_i32 = arith.constant 0 : i32
    %c0_i32_0 = arith.constant 0 : i32
    %c0_i32_1 = arith.constant 0 : i32
    return %arg0, %c0_i32, %c0_i32_0 : i32, i32, i32
  }
  func.func @transform_1(%arg0: i32, %arg1: i32) -> (i32, i32) {
    %c0_i32 = arith.constant 0 : i32
    %c0_i32_0 = arith.constant 0 : i32
    %c0_i32_1 = arith.constant 0 : i32
    return %c0_i32, %c0_i32_0 : i32, i32
  }
  func.func @transform_2(%arg0: i32, %arg1: i32) -> (i32, i32, i32) {
    %c0_i32 = arith.constant 0 : i32
    %c0_i32_0 = arith.constant 0 : i32
    %c0_i32_1 = arith.constant 0 : i32
    return %arg1, %c0_i32, %c0_i32_0 : i32, i32, i32
  }
  func.func @transform_3(%arg0: i32, %arg1: i32) -> (i32, i32, i32) {
    %c0_i32 = arith.constant 0 : i32
    %c0_i32_0 = arith.constant 0 : i32
    %c0_i32_1 = arith.constant 0 : i32
    return %arg1, %c0_i32, %c0_i32_0 : i32, i32, i32
  }
  func.func @transform_4(%arg0: i32, %arg1: i32) -> (i32, i32, i32) {
    %c0_i32 = arith.constant 0 : i32
    %c0_i32_0 = arith.constant 0 : i32
    %c0_i32_1 = arith.constant 0 : i32
    return %arg1, %c0_i32, %c0_i32_0 : i32, i32, i32
  }
  func.func @transform_5(%arg0: i32, %arg1: i32) -> (i32, i32, i32) {
    %c0_i32 = arith.constant 0 : i32
    %c0_i32_0 = arith.constant 0 : i32
    %c0_i32_1 = arith.constant 0 : i32
    return %arg1, %c0_i32, %c0_i32_0 : i32, i32, i32
  }
  func.func @transform_6(%arg0: i32, %arg1: i32) -> (i32, i32, i32) {
    %c0_i32 = arith.constant 0 : i32
    %c0_i32_0 = arith.constant 0 : i32
    %c0_i32_1 = arith.constant 0 : i32
    return %arg1, %c0_i32, %c0_i32_0 : i32, i32, i32
  }
  func.func @transform_7(%arg0: i32, %arg1: i32) -> (i32, i32, i32) {
    %c0_i32 = arith.constant 0 : i32
    %c0_i32_0 = arith.constant 0 : i32
    %c0_i32_1 = arith.constant 0 : i32
    return %arg1, %c0_i32, %c0_i32_0 : i32, i32, i32
  }
  func.func @transform_8(%arg0: i32, %arg1: i32) -> (i32, i32, i32) {
    %c0_i32 = arith.constant 0 : i32
    %c0_i32_0 = arith.constant 0 : i32
    %c0_i32_1 = arith.constant 0 : i32
    return %arg1, %c0_i32, %c0_i32_0 : i32, i32, i32
  }
  func.func @transform_9(%arg0: i32, %arg1: i32) -> (i32, i32, i32) {
    %c0_i32 = arith.constant 0 : i32
    %c0_i32_0 = arith.constant 0 : i32
    %c0_i32_1 = arith.constant 0 : i32
    return %arg1, %c0_i32, %c0_i32_0 : i32, i32, i32
  }
  func.func @transform_10(%arg0: i32, %arg1: i32) -> (i32, i32, i32) {
    %c0_i32 = arith.constant 0 : i32
    %c0_i32_0 = arith.constant 0 : i32
    %c0_i32_1 = arith.constant 0 : i32
    return %arg1, %c0_i32, %c0_i32_0 : i32, i32, i32
  }
  func.func @transform_11(%arg0: i32, %arg1: i32) -> (i32, i32, i32) {
    %c0_i32 = arith.constant 0 : i32
    %c0_i32_0 = arith.constant 0 : i32
    %c0_i32_1 = arith.constant 0 : i32
    return %arg1, %c0_i32, %c0_i32_0 : i32, i32, i32
  }
  func.func @transform_12(%arg0: i32, %arg1: i32) -> (i32, i32, i32) {
    %c0_i32 = arith.constant 0 : i32
    %c0_i32_0 = arith.constant 0 : i32
    %c0_i32_1 = arith.constant 0 : i32
    return %arg1, %c0_i32, %c0_i32_0 : i32, i32, i32
  }
  func.func @transform_13(%arg0: i32, %arg1: i32) -> (i32, i32, i32) {
    %c0_i32 = arith.constant 0 : i32
    %c0_i32_0 = arith.constant 0 : i32
    %c0_i32_1 = arith.constant 0 : i32
    return %arg1, %c0_i32, %c0_i32_0 : i32, i32, i32
  }
  func.func @transform_14(%arg0: i32, %arg1: i32) -> (i32, i32, i32) {
    %c0_i32 = arith.constant 0 : i32
    %c0_i32_0 = arith.constant 0 : i32
    %c0_i32_1 = arith.constant 0 : i32
    return %arg0, %c0_i32, %c0_i32_0 : i32, i32, i32
  }
}

module attributes {stable_mosaic.version = 11 : i64} {
  func.func @lm_head_kernel(%arg0: i32, %arg1: memref<2x32xf32, #tpu.memory_space<vmem>>, %arg2: memref<1x32xf32, #tpu.memory_space<vmem>>, %arg3: memref<1x32xf32, #tpu.memory_space<vmem>>, %arg4: memref<1024x32xbf16, #tpu.memory_space<vmem>>, %arg5: memref<2x1024xf32, #tpu.memory_space<vmem>>) attributes {dimension_semantics = [#tpu.dimension_semantics<parallel>], iteration_bounds = array<i64: 1>, scalar_prefetch = 0 : i64, scratch_operands = 0 : i64, tpu.core_type = #tpu.core_type<tc>, window_params = [{pipeline_mode = #tpu.pipeline_mode<synchronous>, transform_indices = @transform_0, window_bounds = array<i64: 2, 32>}, {pipeline_mode = #tpu.pipeline_mode<synchronous>, transform_indices = @transform_1, window_bounds = array<i64: 1, 32>}, {pipeline_mode = #tpu.pipeline_mode<synchronous>, transform_indices = @transform_2, window_bounds = array<i64: 1, 32>}, {transform_indices = @transform_3, window_bounds = array<i64: 1024, 32>}, {transform_indices = @transform_4, window_bounds = array<i64: 2, 1024>}]} {
    %c0 = arith.constant 0 : index
    %c0_0 = arith.constant 0 : index
    %0 = vector.load %arg1[%c0, %c0_0] : memref<2x32xf32, #tpu.memory_space<vmem>>, vector<2x32xf32>
    %c0_1 = arith.constant 0 : index
    %c0_2 = arith.constant 0 : index
    %1 = vector.load %arg2[%c0_1, %c0_2] : memref<1x32xf32, #tpu.memory_space<vmem>>, vector<1x32xf32>
    %c0_3 = arith.constant 0 : index
    %c0_4 = arith.constant 0 : index
    %2 = vector.load %arg3[%c0_3, %c0_4] : memref<1x32xf32, #tpu.memory_space<vmem>>, vector<1x32xf32>
    %cst = arith.constant dense<0.000000e+00> : vector<2xf32>
    %3 = vector.multi_reduction <add>, %0, %cst [1] : vector<2x32xf32> to vector<2xf32>
    %4 = vector.shape_cast %3 : vector<2xf32> to vector<2x1xf32>
    %cst_5 = arith.constant 3.200000e+01 : f32
    %5 = vector.broadcast %cst_5 : f32 to vector<2x1xf32>
    %6 = arith.divf %4, %5 : vector<2x1xf32>
    %7 = vector.broadcast %6 : vector<2x1xf32> to vector<2x32xf32>
    %8 = arith.subf %0, %7 : vector<2x32xf32>
    %9 = arith.mulf %8, %8 : vector<2x32xf32>
    %cst_6 = arith.constant dense<0.000000e+00> : vector<2xf32>
    %10 = vector.multi_reduction <add>, %9, %cst_6 [1] : vector<2x32xf32> to vector<2xf32>
    %11 = vector.shape_cast %10 : vector<2xf32> to vector<2x1xf32>
    %cst_7 = arith.constant 3.200000e+01 : f32
    %12 = vector.broadcast %cst_7 : f32 to vector<2x1xf32>
    %13 = arith.divf %11, %12 : vector<2x1xf32>
    %14 = vector.broadcast %6 : vector<2x1xf32> to vector<2x32xf32>
    %15 = arith.subf %0, %14 : vector<2x32xf32>
    %cst_8 = arith.constant 9.99999974E-6 : f32
    %16 = vector.broadcast %cst_8 : f32 to vector<2x1xf32>
    %17 = arith.addf %13, %16 : vector<2x1xf32>
    %18 = math.rsqrt %17 : vector<2x1xf32>
    %19 = vector.broadcast %18 : vector<2x1xf32> to vector<2x32xf32>
    %20 = arith.mulf %15, %19 : vector<2x32xf32>
    %21 = vector.broadcast %1 : vector<1x32xf32> to vector<2x32xf32>
    %22 = arith.mulf %20, %21 : vector<2x32xf32>
    %23 = vector.broadcast %2 : vector<1x32xf32> to vector<2x32xf32>
    %24 = arith.addf %22, %23 : vector<2x32xf32>
    %25 = arith.truncf %24 : vector<2x32xf32> to vector<2x32xbf16>
    %c0_9 = arith.constant 0 : index
    %c0_10 = arith.constant 0 : index
    %26 = vector.load %arg4[%c0_9, %c0_10] : memref<1024x32xbf16, #tpu.memory_space<vmem>>, vector<1024x32xbf16>
    %cst_11 = arith.constant dense<0.000000e+00> : vector<2x1024xf32>
    %27 = tpu.matmul %25, %26, %cst_11 {dimension_numbers = #tpu.dot_dimension_numbers<[1], [1], [0], [0], [0, 0, 1, 0], [], []>} : vector<2x32xbf16>, vector<1024x32xbf16>, vector<2x1024xf32> -> vector<2x1024xf32>
    %c0_12 = arith.constant 0 : index
    %c0_13 = arith.constant 0 : index
    %28 = vector.load %arg5[%c0_12, %c0_13] : memref<2x1024xf32, #tpu.memory_space<vmem>>, vector<2x1024xf32>
    tpu.vector_store %arg5[%c0_12, %c0_13], %27 {strides = array<i32>} : memref<2x1024xf32, #tpu.memory_space<vmem>>, vector<2x1024xf32>,
    return
  }
  func.func @transform_0(%arg0: i32) -> (i32, i32) {
    %c0_i32 = arith.constant 0 : i32
    %c0_i32_0 = arith.constant 0 : i32
    %c0_i32_1 = arith.constant 0 : i32
    return %c0_i32, %c0_i32_0 : i32, i32
  }
  func.func @transform_1(%arg0: i32) -> (i32, i32) {
    %c0_i32 = arith.constant 0 : i32
    %c0_i32_0 = arith.constant 0 : i32
    %c0_i32_1 = arith.constant 0 : i32
    return %c0_i32, %c0_i32_0 : i32, i32
  }
  func.func @transform_2(%arg0: i32) -> (i32, i32) {
    %c0_i32 = arith.constant 0 : i32
    %c0_i32_0 = arith.constant 0 : i32
    %c0_i32_1 = arith.constant 0 : i32
    return %c0_i32, %c0_i32_0 : i32, i32
  }
  func.func @transform_3(%arg0: i32) -> (i32, i32) {
    %c0_i32 = arith.constant 0 : i32
    %c0_i32_0 = arith.constant 0 : i32
    return %arg0, %c0_i32 : i32, i32
  }
  func.func @transform_4(%arg0: i32) -> (i32, i32) {
    %c0_i32 = arith.constant 0 : i32
    %c0_i32_0 = arith.constant 0 : i32
    return %c0_i32, %arg0 : i32, i32
  }
}

</mosaic_0001>

<bundles_post_ra>
// kernel: llm_forward.2
= control target key start
LH: loop header
LB: loop body
LE: loop exit
PB: predicated region body
PF: predicated region fallthrough
CT: control target
= control target key end

     0   :  { %s2137_s29 = smov 0   ;;  %s2139_s30 = smov 0   ;;  %s2420_s0 = inlined_call_operand.vmem [shape: f32[2,8,32], index: 0, kind: input, shape index: {}]   ;;  %s2421_s1 = inlined_call_operand.vmem [shape: f32[8,8], index: 1, kind: input, shape index: {}]   ;;  %s2422_s2 = inlined_call_operand.vmem [shape: f32[2,1,32], index: 2, kind: input, shape index: {}]   ;;  %s2423_s3 = inlined_call_operand.vmem [shape: f32[2,1,32], index: 3, kind: input, shape index: {}]   ;;  %s2424_s4 = inlined_call_operand.vmem [shape: bf16[2,32,96], index: 4, kind: input, shape index: {}]   ;;  %s2425_s5 = inlined_call_operand.vmem [shape: f32[2,1,96], index: 5, kind: input, shape index: {}]   ;;  %s2426_s6 = inlined_call_operand.vmem [shape: bf16[2,32,32], index: 6, kind: input, shape index: {}]   ;;  %s2427_s7 = inlined_call_operand.vmem [shape: f32[2,1,32], index: 7, kind: input, shape index: {}]   ;;  %s2428_s8 = inlined_call_operand.vmem [shape: f32[2,1,32], index: 8, kind: input, shape index: {}]   ;;  %s2429_s9 = inlined_call_operand.vmem [shape: f32[2,1,32], index: 9, kind: input, shape index: {}]   ;;  %s2430_s10 = inlined_call_operand.vmem [shape: bf16[2,32,128], index: 10, kind: input, shape index: {}]   ;;  %s2431_s11 = inlined_call_operand.vmem [shape: f32[2,1,128], index: 11, kind: input, shape index: {}]   ;;  %s2432_s12 = inlined_call_operand.vmem [shape: bf16[2,128,32], index: 12, kind: input, shape index: {}]   ;;  %s2433_s13 = inlined_call_operand.vmem [shape: f32[2,1,32], index: 13, kind: input, shape index: {}]   ;;  %s2434_s14 = inlined_call_operand.vmem [shape: f32[2,8,32], index: 14, kind: output, shape index: {}]  }
   0x1   :  { %2439 = sst [smem:[#allocation8_spill]] %s2420_s0  ;;  %s2141_s15 = smov 0  }
   0x2   :  { %2440 = sst [smem:[#allocation9_spill]] %s2421_s1  ;;  %s2143_s16 = smov 0  }
   0x3   :  { %2441 = sst [smem:[#allocation10_spill]] %s2423_s3  ;;  %s2145_s17 = smov 0  }
   0x4   :  { %2442 = sst [smem:[#allocation11_spill]] %s2424_s4 }
   0x5   :  { %2443 = sst [smem:[#allocation12_spill]] %s2426_s6 }
   0x6   :  { %2444 = sst [smem:[#allocation13_spill]] %s2434_s14 }
   0x7 LB: > { %2445 = sst [smem:[#allocation2_spill]] %s2034_s29  ;;  %s33_s18 = sadd.s32 1, %s2042_s15  ;;  %s2050_s17 = sphi %s2145_s17, %s24_s17   ;;  %s2046_s16 = sphi %s2143_s16, %s2469_s16   ;;  %s2042_s15 = sphi %s2141_s15, %s2468_s15   ;;  %s2038_s30 = sphi %s2139_s30, %s2467_s30   ;;  %s2034_s29 = sphi %s2137_s29, %s2466_s29  }
   0x8   : > { %2446 = sst [smem:[#allocation3_spill]] %s2042_s15  ;;  %s36_s19 = sadd.s32 1, %s2046_s16 }
   0x9   : > { %2447 = sst [smem:[#allocation4_spill]] %s2046_s16  ;;  %p34_p0 = scmp.ge.s32.totalorder %s33_s18, 2 }
   0xa   : > { %2448 = sst [smem:[#allocation5_spill]] %s2050_s17  ;;  %p1745_p1 = scmp.ge.s32.totalorder %s2050_s17, 1 }
   0xb   : > { %p527_p2 = scmp.lt.s32.totalorder %s2050_s17, 5  ;;  %s2471_s18 = smov (%p34_p0, %s33_s18), 0 }
   0xc   : > { %2449 = sst [smem:[#allocation6_spill]] %s2471_s18  ;;  %s2473_s19 = smov (!%p34_p0, %s36_s19), %s2046_s16 }
   0xd   : > { %p528_p3 = pnand %p1745_p1, %p527_p2  ;;  %p38_p4 = scmp.ge.s32.totalorder %s2473_s19, 2 }
   0xe   : > { %p615_p5 = scmp.lt.s32.totalorder (!%p528_p3), %s2038_s30, 1  ;;  %p619_p6 = scmp.lt.s32.totalorder (!%p528_p3), %s2034_s29, 1 }
   0xf   : > { %s2475_s19 = smov (%p38_p4, %s2473_s19), 0  ;;  %531 = sbr.rel (%p528_p3) target bundleno = 2696 (0xa88), region = 76 }
  0x10   : > { %2450 = sst [smem:[#allocation7_spill]] %s2475_s19  ;;  %s2451_s0 = sld [smem:[#allocation8_spill]] (!%p528_p3) }
  0x11   : > { %s2453_s4 = sld [smem:[#allocation11_spill]] (!%p528_p3)  ;;  %s2454_s6 = sld [smem:[#allocation12_spill]] (!%p528_p3) }
  0x16   : > { %s2477_s30 = smov (!%p615_p5, %s2038_s30), 1 }
  0x17   : > { %s2171_s20 = scalar_select %p619_p6, %s2034_s29, 1 }
  0x18   : > { %s1746_s21 = sshll.u32 %s2477_s30, 3 }
  0x19   : > { %s618_s24 = scalar_lea.vmem %s2451_s0, %s1746_s21  ;;  %s1794_s16 = sshll.u32 %s2171_s20, 4 }
  0x1a   : > { %s2188_s1 = scalar_lea.vmem %s2453_s4, %s1794_s16  ;;  %s2197_s0 = scalar_lea.vmem %s2454_s6, %s1794_s16 }
  0x1b   : > { %s2214_s30 = scalar_lea.vmem %s2430_s10, %s1794_s16  ;;  %s654_s14 = scalar_lea.vmem %s2431_s11, %s2171_s20 }
  0x1c   : > { %s1797_s6 = sshll.u32 %s2171_s20, 6  ;;  %s662_s19 = scalar_lea.vmem %s2433_s13, %s2171_s20 }
  0x1d   : > { %s2228_s27 = scalar_lea.vmem %s2432_s12, %s1797_s6  ;;  %s2455_s4 = sld [smem:[#allocation13_spill]] }
  0x1e   : > { %s2456_s16 = sld [smem:[#allocation2_spill]] }
  0x23   : > { %s2233_s3 = scalar_lea.vmem %s2455_s4, %s1746_s21 }
  0x24   : > { %p1756_p7 = scmp.ne.s32.totalorder %s2456_s16, 0 }
  0x25   : > { %v672_v0 = vld [vmem:[%s618_s24] sm:$0xff] (!%p1756_p7)  ;;  %vm673_vm0 = vcmask (!%p1756_p7), 261120  }
  0x26   : > { %671 = sbr.rel (%p1756_p7) target bundleno = 45 (0x2d), region = 80  ;;  %674 = vst.msk [vmem:[%s2233_s3] sm:$0xff] (!%p1756_p7), %vm673_vm0, %v672_v0 }
  0x2d PF: > { %v2238_v1 = vld [vmem:[%s2233_s3] sm:$0xff]  ;;  %vm678_vm1 = vcmask 261120   ;;  %v2052_v9 = vmov 0.0   ;;  %vm2053_vm2 = vmmov 0   ;;  %v1975_v10 = vld [vmem:[%s2188_s1 + $0x8] sm:$0xff]   ;;  %s2458_s29 = sld [smem:[#allocation10_spill]]  ;;  %s2460_s26 = scalar_lea.vmem %s2425_s5, %s2171_s20 }
  0x2e   : > { %v679_v2 = vsel %vm678_vm1, %v2238_v1, 0.0  ;;  %v1974_v8 = vld [vmem:[%s2188_s1] sm:$0xff]   ;;  %1832 = vmatprep.subr.bf16.mxu0 %v2052_v9  ;;  %1836 = vmatprep.mubr.msk.bf16.mxu0 %vm2053_vm2, %v2052_v9  ;;  %s2457_s1 = scalar_lea.vmem %s2422_s2, %s2171_s20  ;;  %s2054_s18 = smov 104   ;;  %vm800_vm3 = vcmask 64512   ;;  %vm1047_vm4 = vcmask 1043456   ;;  %vm1248_vm5 = vcmask 130048  }
  0x2f   : > { %680 = vadd.xlane.f32.xlu0 %v679_v2  ;;  %1833 = vmatpush3.bf16.msra.mxu0 %v1974_v8  ;;  %v1757_v15 = vld [vmem:[%s2457_s1] ss:$0 sm:$0xff]  ;;  %s2055_s28 = smov 120   ;;  %s2056_s15 = smov 112   ;;  %vm1250_vm6 = vcmask 195584  }
  0x30   : > { %1852 = vmatprep.subr.bf16.mxu1 %v2052_v9  ;;  %1834 = vmatprep.subr.bf16.mxu0 %v2052_v9  ;;  %v1759_v21 = vld [vmem:[%s2460_s26] ss:$0 sm:$0xff]  ;;  %s2057_s17 = smov 96   ;;  %s2461_s6 = sld [smem:[#allocation9_spill]] }
  0x31   : > { %1854 = vmatprep.mubr.msk.bf16.mxu1 %vm2053_vm2, %v2052_v9  ;;  %s2058_s1 = smov 64   ;;  %s2059_s21 = smov 8  }
  0x32   : > { %s2060_s24 = smov 16   ;;  %s2462_s23 = scalar_lea.vmem %s2427_s7, %s2171_s20 }
  0x33   : > { %1835 = vmatpush3.bf16.msra.mxu0 %v1975_v10  ;;  %s2459_s22 = scalar_lea.vmem %s2458_s29, %s2171_s20  ;;  %s2061_s29 = smov 24  }
  0x34   : > { %1840 = vmatprep.subr.bf16.mxu0 %v2052_v9  ;;  %v1758_v17 = vld [vmem:[%s2459_s22] ss:$0 sm:$0xff] }
  0x36   : > { %v796_v50 = vld [vmem:[%s2461_s6] sm:$0xff] }
  0xbc   : > { %v681_v3 = vpop.xlane.xlu0 %680 }
  0xbd   : > { %v683_v4 = vmul.f32 0.03125, %v681_v3 }
  0xbf   : > { %v684_v5 = vsub.f32 %v2238_v1, %v683_v4 }
  0xc1   : > { %v685_v6 = vmul.f32 %v684_v5, %v684_v5 }
  0xc3   : > { %v686_v7 = vsel %vm678_vm1, %v685_v6, 0.0 }
  0xc4   : > { %687 = vadd.xlane.f32.xlu0 %v686_v7 }
 0x151   : > { %v688_v11 = vpop.xlane.xlu0 %687 }
 0x152   : > { %v689_v12 = vmul.f32 0.03125, %v688_v11 }
 0x154   : > { %v690_v13 = vadd.f32 1e-05, %v689_v12 }
 0x156   : > { %1988 = vrsqrt.f32 %v690_v13 }
 0x160   : > { %v1989_v14 = vpop.eup %1988 }
 0x161   : > { %v692_v16 = vmul.f32 %v1989_v14, %v684_v5 }
 0x163   : > { %v699_v18 = vmul.f32 %v1757_v15, %v692_v16 }
 0x165   : > { %v706_v19 = vadd.f32 %v1758_v17, %v699_v18 }
 0x167   : > { %v707_v20 = vpack.c.bf16 %v706_v19, %v706_v19 }
 0x169   : > { %1837 = vmatmul.mubr.msk.bf16.vlgmr.msra.gmra.mrb[0].mxu0 %vm678_vm1, %v707_v20 }
 0x16a   : > { %1842 = vmatprep.mubr.msk.bf16.mxu0 %vm2053_vm2, %v2052_v9 }
 0x23c   : > { %v768_v22 = vpop.f32.mrb[0].mxu0 }
 0x23d   : > { %v769_v23 = vadd.f32 %v1759_v21, %v768_v22  ;;  %v1838_v24 = vpop.f32.mrb[1].mxu0 }
 0x23e   : > { %v771_v25 = vpop.f32.mrb[2].mxu0 }
 0x23f   : > { %781 = vrot.lane.b32.xlu0 %v769_v23, %s2054_s18  ;;  %775 = vrot.lane.b32.xlu1 %v769_v23, %s2055_s28  ;;  %v1839_v26 = vpop.f32.mrb[3].mxu0  ;;  %v2272_v27 = vpack.c.bf16 %v769_v23, %v769_v23  ;;  %v784_v36 = vmul.f32 0.35355338, %v769_v23  ;;  %s2463_s18 = scalar_lea.vmem %s2428_s8, %s2171_s20 }
 0x241   : > { %v788_v37 = vpack.c.bf16 %v784_v36, %v784_v36 }
 0x243   : > { %778 = vrot.lane.b32.xlu1 %v769_v23, %s2056_s15 }
 0x247   : > { %798 = vrot.lane.b32.xlu1 %v2272_v27, %s2057_s17 }
 0x2b1   : > { %v776_v28 = vpop.permute.xlu1 %775  ;;  %v782_v32 = vpop.permute.xlu0 %781 }
 0x2b2   : > { %v2275_v29 = vpack.c.bf16 %v776_v28, %v776_v28  ;;  %v2281_v34 = vpack.c.bf16 %v782_v32, %v782_v32  ;;  %v785_v40 = vmul.f32 0.35355338, %v776_v28  ;;  %v787_v47 = vmul.f32 0.35355338, %v782_v32 }
 0x2b4   : > { %848 = vrot.lane.b32.xlu1 %v2275_v29, %s2057_s17  ;;  %v789_v43 = vpack.c.bf16 %v785_v40, %v785_v40  ;;  %v791_v49 = vpack.c.bf16 %v787_v47, %v787_v47 }
 0x2b5   : > { %v779_v30 = vpop.permute.xlu1 %778 }
 0x2b6   : > { %v2278_v31 = vpack.c.bf16 %v779_v30, %v779_v30  ;;  %v786_v44 = vmul.f32 0.35355338, %v779_v30 }
 0x2b8   : > { %897 = vrot.lane.b32.xlu1 %v2278_v31, %s2057_s17  ;;  %v790_v48 = vpack.c.bf16 %v786_v44, %v786_v44 }
 0x2b9   : > { %v799_v33 = vpop.permute.xlu1 %798 }
 0x2ba   : > { %v805_v35 = vsel %vm800_vm3, %v799_v33, 0 }
 0x2bb   : > { %1841 = vmatpush3.bf16.xpose.msra.mxu0 %v805_v35 }
 0x2bc   : > { %946 = vrot.lane.b32.xlu1 %v2281_v34, %s2057_s17  ;;  %1846 = vmatprep.subr.bf16.mxu0 %v2052_v9  ;;  %s2464_s17 = scalar_lea.vmem %s2429_s9, %s2171_s20 }
 0x2c2   : > { %1843 = vmatmul.mubr.msk.bf16.vlgmr.msra.gmra.mrb[4].mxu0 %vm800_vm3, %v788_v37 }
 0x2c3   : > { %1848 = vmatprep.mubr.msk.bf16.mxu0 %vm2053_vm2, %v2052_v9 }
 0x326   : > { %v849_v38 = vpop.permute.xlu1 %848 }
 0x327   : > { %v854_v39 = vsel %vm800_vm3, %v849_v38, 0 }
 0x328   : > { %1847 = vmatpush3.bf16.xpose.msra.mxu0 %v854_v39 }
 0x329   : > { %1858 = vmatprep.subr.bf16.mxu0 %v2052_v9 }
 0x32a   : > { %v898_v41 = vpop.permute.xlu1 %897 }
 0x32b   : > { %v903_v42 = vsel %vm800_vm3, %v898_v41, 0 }
 0x32c   : > { %1853 = vmatpush3.bf16.xpose.msra.mxu1 %v903_v42 }
 0x32d   : > { %1864 = vmatprep.subr.bf16.mxu1 %v2052_v9 }
 0x32e   : > { %v947_v45 = vpop.permute.xlu1 %946 }
 0x32f   : > { %v952_v46 = vsel %vm800_vm3, %v947_v45, 0  ;;  %1849 = vmatmul.mubr.msk.bf16.vlgmr.msra.gmra.mrb[8].mxu0 %vm800_vm3, %v789_v43 }
 0x330   : > { %1859 = vmatpush3.bf16.xpose.msra.mxu0 %v952_v46  ;;  %1860 = vmatprep.mubr.msk.bf16.mxu0 %vm2053_vm2, %v2052_v9 }
 0x331   : > { %1870 = vmatprep.subr.bf16.mxu0 %v2052_v9 }
 0x333   : > { %1855 = vmatmul.mubr.msk.bf16.vlgmr.msra.gmra.mrb[0].mxu1 %vm800_vm3, %v790_v48 }
 0x334   : > { %1866 = vmatprep.mubr.msk.bf16.mxu1 %vm2053_vm2, %v2052_v9 }
 0x337   : > { %1861 = vmatmul.mubr.msk.bf16.vlgmr.msra.gmra.mrb[12].mxu0 %vm800_vm3, %v791_v49 }
 0x338   : > { %1872 = vmatprep.mubr.msk.bf16.mxu0 %vm2053_vm2, %v2052_v9 }
 0x395   : > { %v841_v51 = vpop.f32.mrb[4].mxu0 }
 0x396   : > { %v842_v52 = vadd.f32 %v841_v51, %v796_v50  ;;  %v1844_v53 = vpop.f32.mrb[5].mxu0 }
 0x397   : > { %v844_v54 = vpop.f32.mrb[6].mxu0 }
 0x398   : > { %v1845_v55 = vpop.f32.mrb[7].mxu0  ;;  %v994_v56 = vsel %vm800_vm3, %v842_v52, -inf }
 0x399   : > { %995 = vmax.xlane.f32.xlu1 %v994_v56 }
 0x402   : > { %v890_v57 = vpop.f32.mrb[8].mxu0 }
 0x403   : > { %v891_v58 = vadd.f32 %v890_v57, %v796_v50  ;;  %v1850_v59 = vpop.f32.mrb[9].mxu0 }
 0x404   : > { %v893_v60 = vpop.f32.mrb[10].mxu0 }
 0x405   : > { %v1851_v61 = vpop.f32.mrb[11].mxu0  ;;  %v997_v62 = vsel %vm800_vm3, %v891_v58, -inf }
 0x406   : > { %v939_v63 = vpop.f32.mrb[0].mxu1  ;;  %998 = vmax.xlane.f32.xlu0 %v997_v62  ;;  %v1976_v61 = vld [vmem:[%s2197_s0] sm:$0xff]   ;;  %v1977_v62 = vld [vmem:[%s2197_s0 + $0x8] sm:$0xff]  }
 0x407   : > { %v940_v0 = vadd.f32 %v939_v63, %v796_v50  ;;  %v1856_v2 = vpop.f32.mrb[1].mxu1 }
 0x408   : > { %v942_v3 = vpop.f32.mrb[2].mxu1 }
 0x409   : > { %v1857_v4 = vpop.f32.mrb[3].mxu1  ;;  %v1000_v5 = vsel %vm800_vm3, %v940_v0, -inf }
 0x40a   : > { %1001 = vmax.xlane.f32.xlu1 %v1000_v5  ;;  %v988_v6 = vpop.f32.mrb[12].mxu0 }
 0x40b   : > { %v989_v7 = vadd.f32 %v988_v6, %v796_v50  ;;  %v1862_v8 = vpop.f32.mrb[13].mxu0 }
 0x40c   : > { %v991_v10 = vpop.f32.mrb[14].mxu0 }
 0x40d   : > { %v1863_v11 = vpop.f32.mrb[15].mxu0  ;;  %v1003_v12 = vsel %vm800_vm3, %v989_v7, -inf }
 0x40e   : > { %1004 = vmax.xlane.f32.xlu0 %v1003_v12 }
 0x41b   : > { %1042 = vrot.lane.b32.xlu1 %v2272_v27, %s2058_s1 }
 0x426   : > { %v996_v13 = vpop.xlane.xlu1 %995 }
 0x427   : > { %v1006_v14 = vsub.f32 %v842_v52, %v996_v13 }
 0x429   : > { %v1010_v15 = vmul.f32 1.442695, %v1006_v14 }
 0x42b   : > { %1990 = vpow2.f32 %v1010_v15 }
 0x435   : > { %v1991_v16 = vpop.eup %1990 }
 0x436   : > { %v1018_v17 = vsel %vm800_vm3, %v1991_v16, 0.0 }
 0x43f   : > { %1019 = vadd.xlane.f32.xlu1 %v1018_v17 }
 0x493   : > { %v999_v18 = vpop.xlane.xlu0 %998 }
 0x494   : > { %v1007_v19 = vsub.f32 %v891_v58, %v999_v18 }
 0x496   : > { %v1012_v20 = vmul.f32 1.442695, %v1007_v19 }
 0x497   : > { %v1002_v21 = vpop.xlane.xlu1 %1001 }
 0x498   : > { %1992 = vpow2.f32 %v1012_v20  ;;  %v1008_v22 = vsub.f32 %v940_v0, %v1002_v21  ;;  %v1771_v20 = vld [vmem:[%s2462_s23] ss:$0 sm:$0xff] }
 0x49a   : > { %v1014_v23 = vmul.f32 1.442695, %v1008_v22 }
 0x49b   : > { %v1043_v24 = vpop.permute.xlu1 %1042  ;;  %v1005_v25 = vpop.xlane.xlu0 %1004 }
 0x49c   : > { %1994 = vpow2.f32 %v1014_v23  ;;  %v1049_v26 = vsel %vm1047_vm4, %v1043_v24, 0  ;;  %v1009_v27 = vsub.f32 %v989_v7, %v1005_v25 }
 0x49d   : > { %1865 = vmatpush3.bf16.msra.mxu1 %v1049_v26 }
 0x49e   : > { %v1016_v28 = vmul.f32 1.442695, %v1009_v27  ;;  %1876 = vmatprep.subr.bf16.mxu1 %v2052_v9 }
 0x4a0   : > { %1996 = vpow2.f32 %v1016_v28 }
 0x4a2   : > { %v1993_v30 = vpop.eup %1992 }
 0x4a3   : > { %v1021_v32 = vsel %vm800_vm3, %v1993_v30, 0.0 }
 0x4a4   : > { %1022 = vadd.xlane.f32.xlu0 %v1021_v32 }
 0x4a6   : > { %v1995_v33 = vpop.eup %1994 }
 0x4a7   : > { %v1024_v35 = vsel %vm800_vm3, %v1995_v33, 0.0 }
 0x4a8   : > { %1025 = vadd.xlane.f32.xlu1 %v1024_v35 }
 0x4aa   : > { %v1997_v36 = vpop.eup %1996 }
 0x4ab   : > { %v1027_v37 = vsel %vm800_vm3, %v1997_v36, 0.0 }
 0x4ac   : > { %1028 = vadd.xlane.f32.xlu0 %v1027_v37 }
 0x4b9   : > { %1139 = vrot.lane.b32.xlu1 %v2278_v31, %s2058_s1 }
 0x4bd   : > { %1187 = vrot.lane.b32.xlu1 %v2281_v34, %s2058_s1 }
 0x4c2   : > { %1091 = vrot.lane.b32.xlu0 %v2275_v29, %s2058_s1 }
 0x4cc   : > { %v1020_v38 = vpop.xlane.xlu1 %1019 }
 0x4cd   : > { %1998 = vrcp.f32 %v1020_v38 }
 0x4d7   : > { %v1999_v39 = vpop.eup %1998 }
 0x4d8   : > { %v1034_v40 = vmul.f32 %v1999_v39, %v1991_v16 }
 0x4da   : > { %v1038_v41 = vpack.c.bf16 %v1034_v40, %v1034_v40 }
 0x4dc   : > { %1867 = vmatmul.mubr.msk.bf16.vlgmr.msra.gmra.mrb[4].mxu1 %vm800_vm3, %v1038_v41  ;;  %v1775_v41 = vld [vmem:[%s2463_s18] ss:$0 sm:$0xff] }
 0x4dd   : > { %1878 = vmatprep.mubr.msk.bf16.mxu1 %vm2053_vm2, %v2052_v9 }
 0x531   : > { %v1023_v42 = vpop.xlane.xlu0 %1022 }
 0x532   : > { %2000 = vrcp.f32 %v1023_v42 }
 0x535   : > { %v1026_v43 = vpop.xlane.xlu1 %1025 }
 0x536   : > { %2002 = vrcp.f32 %v1026_v43  ;;  %v1776_v43 = vld [vmem:[%s2464_s17] ss:$0 sm:$0xff] }
 0x539   : > { %v1140_v31 = vpop.permute.xlu1 %1139  ;;  %v1029_v44 = vpop.xlane.xlu0 %1028 }
 0x53a   : > { %v1145_v34 = vsel %vm1047_vm4, %v1140_v31, 0  ;;  %2004 = vrcp.f32 %v1029_v44 }
 0x53b   : > { %1877 = vmatpush3.bf16.msra.mxu1 %v1145_v34 }
 0x53c   : > { %v2001_v29 = vpop.eup %2000  ;;  %1888 = vmatprep.subr.bf16.mxu1 %v2052_v9 }
 0x53d   : > { %v1035_v45 = vmul.f32 %v2001_v29, %v1993_v30  ;;  %v1092_v46 = vpop.permute.xlu0 %1091  ;;  %v1188_v48 = vpop.permute.xlu1 %1187  ;;  %v1980_v29 = vld [vmem:[%s2228_s27] sm:$0xff]  }
 0x53e   : > { %v1097_v47 = vsel %vm1047_vm4, %v1092_v46, 0  ;;  %v1193_v52 = vsel %vm1047_vm4, %v1188_v48, 0  ;;  %v1982_v46 = vld [vmem:[%s2228_s27 + $0x10] sm:$0xff]   ;;  %v1984_v48 = vld [vmem:[%s2228_s27 + $0x20] sm:$0xff]  }
 0x53f   : > { %1871 = vmatpush3.bf16.msra.mxu0 %v1097_v47  ;;  %v1039_v49 = vpack.c.bf16 %v1035_v45, %v1035_v45  ;;  %v1981_v45 = vld [vmem:[%s2228_s27 + $0x8] sm:$0xff]   ;;  %v1983_v47 = vld [vmem:[%s2228_s27 + $0x18] sm:$0xff]  }
 0x540   : > { %v2003_v50 = vpop.eup %2002  ;;  %1882 = vmatprep.subr.bf16.mxu0 %v2052_v9 }
 0x541   : > { %v1036_v51 = vmul.f32 %v2003_v50, %v1995_v33  ;;  %v1986_v50 = vld [vmem:[%s2228_s27 + $0x30] sm:$0xff]  }
 0x542   : > { %1873 = vmatmul.mubr.msk.bf16.vlgmr.msra.gmra.mrb[16].mxu0 %vm800_vm3, %v1039_v49  ;;  %v1985_v49 = vld [vmem:[%s2228_s27 + $0x28] sm:$0xff]  }
 0x543   : > { %1883 = vmatpush3.bf16.msra.mxu0 %v1193_v52  ;;  %v1040_v53 = vpack.c.bf16 %v1036_v51, %v1036_v51  ;;  %1884 = vmatprep.mubr.msk.bf16.mxu0 %vm2053_vm2, %v2052_v9  ;;  %v1987_v51 = vld [vmem:[%s2228_s27 + $0x38] sm:$0xff]   ;;  %v1777_v52 = vld [vmem:[%s654_s14] ss:$0 sm:$0xff] }
 0x544   : > { %v2005_v54 = vpop.eup %2004  ;;  %1896 = vmatprep.subr.bf16.mxu0 %v2052_v9 }
 0x545   : > { %v1037_v55 = vmul.f32 %v2005_v54, %v1997_v36  ;;  %1879 = vmatmul.mubr.msk.bf16.vlgmr.msra.gmra.mrb[8].mxu1 %vm800_vm3, %v1040_v53  ;;  %v1978_v36 = vld [vmem:[%s2214_s30] sm:$0xff]  }
 0x546   : > { %1892 = vmatprep.mubr.msk.bf16.mxu1 %vm2053_vm2, %v2052_v9  ;;  %1889 = vmatpush3.bf16.msra.mxu1 %v1976_v61 }
 0x547   : > { %v1041_v56 = vpack.c.bf16 %v1037_v55, %v1037_v55  ;;  %1890 = vmatprep.subr.bf16.mxu1 %v2052_v9 }
 0x54a   : > { %1885 = vmatmul.mubr.msk.bf16.vlgmr.msra.gmra.mrb[20].mxu0 %vm800_vm3, %v1041_v56  ;;  %1891 = vmatpush3.bf16.msra.mxu1 %v1977_v62 }
 0x54b   : > { %1900 = vmatprep.mubr.msk.bf16.mxu0 %vm2053_vm2, %v2052_v9  ;;  %1904 = vmatprep.subr.bf16.mxu1 %v2052_v9 }
 0x54c   : > { %1897 = vmatpush3.bf16.msra.mxu0 %v1978_v36 }
 0x54d   : > { %1898 = vmatprep.subr.bf16.mxu0 %v2052_v9 }
 0x5af   : > { %v1085_v57 = vpop.f32.mrb[4].mxu1 }
 0x5b0   : > { %v1868_v58 = vpop.f32.mrb[5].mxu1 }
 0x5b1   : > { %v1088_v59 = vpop.f32.mrb[6].mxu1 }
 0x5b2   : > { %v1869_v60 = vpop.f32.mrb[7].mxu1 }
 0x615   : > { %v1133_v63 = vpop.f32.mrb[16].mxu0 }
 0x616   : > { %1236 = vrot.lane.b32.xlu0 %v1133_v63, %s2059_s21  ;;  %v1874_v0 = vpop.f32.mrb[17].mxu0 }
 0x617   : > { %v1136_v2 = vpop.f32.mrb[18].mxu0 }
 0x618   : > { %v1875_v3 = vpop.f32.mrb[19].mxu0  ;;  %v1181_v4 = vpop.f32.mrb[8].mxu1 }
 0x619   : > { %1240 = vrot.lane.b32.xlu1 %v1181_v4, %s2060_s24  ;;  %v1880_v5 = vpop.f32.mrb[9].mxu1 }
 0x61a   : > { %v1184_v6 = vpop.f32.mrb[10].mxu1 }
 0x61b   : > { %v1881_v7 = vpop.f32.mrb[11].mxu1 }
 0x61d   : > { %v1229_v8 = vpop.f32.mrb[20].mxu0 }
 0x61e   : > { %1244 = vrot.lane.b32.xlu0 %v1229_v8, %s2061_s29  ;;  %v1886_v10 = vpop.f32.mrb[21].mxu0 }
 0x61f   : > { %v1232_v11 = vpop.f32.mrb[22].mxu0 }
 0x620   : > { %v1887_v12 = vpop.f32.mrb[23].mxu0 }
 0x688   : > { %v1237_v13 = vpop.permute.xlu0 %1236 }
 0x689   : > { %v1247_v15 = vsel %vm800_vm3, %v1085_v57, %v1237_v13 }
 0x68b   : > { %v1241_v14 = vpop.permute.xlu1 %1240 }
 0x68c   : > { %v1249_v16 = vsel %vm1248_vm5, %v1247_v15, %v1241_v14 }
 0x690   : > { %v1245_v17 = vpop.permute.xlu0 %1244 }
 0x691   : > { %v1251_v18 = vsel %vm1250_vm6, %v1249_v16, %v1245_v17 }
 0x692   : > { %v1252_v19 = vpack.c.bf16 %v1251_v18, %v1251_v18 }
 0x694   : > { %1893 = vmatmul.mubr.msk.bf16.vlgmr.msra.gmra.mrb[12].mxu1 %vm678_vm1, %v1252_v19 }
 0x695   : > { %1920 = vmatprep.mubr.msk.bf16.mxu1 %vm2053_vm2, %v2052_v9  ;;  %1905 = vmatpush3.bf16.msra.mxu1 %v1980_v29 }
 0x696   : > { %1906 = vmatprep.subr.bf16.mxu1 %v2052_v9 }
 0x699   : > { %1907 = vmatpush3.bf16.msra.mxu1 %v1981_v45 }
 0x69a   : > { %1908 = vmatprep.subr.bf16.mxu1 %v2052_v9 }
 0x69d   : > { %1909 = vmatpush3.bf16.msra.mxu1 %v1982_v46 }
 0x69e   : > { %1910 = vmatprep.subr.bf16.mxu1 %v2052_v9 }
 0x6a1   : > { %1911 = vmatpush3.bf16.msra.mxu1 %v1983_v47 }
 0x6a2   : > { %1912 = vmatprep.subr.bf16.mxu1 %v2052_v9 }
 0x6a5   : > { %1913 = vmatpush3.bf16.msra.mxu1 %v1984_v48 }
 0x6a6   : > { %1914 = vmatprep.subr.bf16.mxu1 %v2052_v9 }
 0x6a9   : > { %1915 = vmatpush3.bf16.msra.mxu1 %v1985_v49 }
 0x6aa   : > { %1916 = vmatprep.subr.bf16.mxu1 %v2052_v9 }
 0x6ad   : > { %1917 = vmatpush3.bf16.msra.mxu1 %v1986_v50 }
 0x6ae   : > { %1918 = vmatprep.subr.bf16.mxu1 %v2052_v9 }
 0x6b1   : > { %1919 = vmatpush3.bf16.msra.mxu1 %v1987_v51 }
 0x767   : > { %v1313_v21 = vpop.f32.mrb[12].mxu1 }
 0x768   : > { %v1314_v22 = vadd.f32 %v1771_v20, %v1313_v21  ;;  %v1894_v23 = vpop.f32.mrb[13].mxu1  ;;  %v1783_v21 = vld [vmem:[%s662_s19] ss:$0 sm:$0xff] }
 0x769   : > { %v1316_v24 = vpop.f32.mrb[14].mxu1 }
 0x76a   : > { %v2357_v25 = vadd.f32 %v1314_v22, %v2238_v1  ;;  %v1895_v26 = vpop.f32.mrb[15].mxu1  ;;  %v1979_v1 = vld [vmem:[%s2214_s30 + $0x8] sm:$0xff]  }
 0x76b   : > { %1899 = vmatpush3.bf16.msra.mxu0 %v1979_v1 }
 0x76c   : > { %v1322_v27 = vsel %vm678_vm1, %v2357_v25, 0.0 }
 0x76d   : > { %1323 = vadd.xlane.f32.xlu1 %v1322_v27 }
 0x7fa   : > { %v1324_v28 = vpop.xlane.xlu1 %1323 }
 0x7fb   : > { %v1325_v30 = vmul.f32 0.03125, %v1324_v28 }
 0x7fd   : > { %v1326_v32 = vsub.f32 %v2357_v25, %v1325_v30 }
 0x7ff   : > { %v1327_v33 = vmul.f32 %v1326_v32, %v1326_v32 }
 0x801   : > { %v1328_v35 = vsel %vm678_vm1, %v1327_v33, 0.0 }
 0x802   : > { %1329 = vadd.xlane.f32.xlu0 %v1328_v35 }
 0x88f   : > { %v1330_v37 = vpop.xlane.xlu0 %1329 }
 0x890   : > { %v1331_v38 = vmul.f32 0.03125, %v1330_v37 }
 0x892   : > { %v1332_v39 = vadd.f32 1e-05, %v1331_v38 }
 0x894   : > { %2006 = vrsqrt.f32 %v1332_v39 }
 0x89e   : > { %v2007_v40 = vpop.eup %2006 }
 0x89f   : > { %v1334_v42 = vmul.f32 %v2007_v40, %v1326_v32 }
 0x8a1   : > { %v1341_v31 = vmul.f32 %v1775_v41, %v1334_v42 }
 0x8a3   : > { %v1348_v44 = vadd.f32 %v1776_v43, %v1341_v31 }
 0x8a5   : > { %v1349_v34 = vpack.c.bf16 %v1348_v44, %v1348_v44 }
 0x8a7   : > { %1901 = vmatmul.mubr.msk.bf16.vlgmr.msra.gmra.mrb[24].mxu0 %vm678_vm1, %v1349_v34 }
 0x97a   : > { %v1410_v53 = vpop.f32.mrb[24].mxu0 }
 0x97b   : > { %v1411_v54 = vadd.f32 %v1777_v52, %v1410_v53  ;;  %v1902_v55 = vpop.f32.mrb[25].mxu0 }
 0x97c   : > { %v1413_v56 = vpop.f32.mrb[26].mxu0 }
 0x97d   : > { %v1417_v57 = vmul.f32 0.70710677, %v1411_v54  ;;  %v1903_v58 = vpop.f32.mrb[27].mxu0  ;;  %v1416_v17 = vmul.f32 0.5, %v1411_v54 }
 0x97f   : > { %v1418_v59 = vand.u32 2147483647, %v1417_v57  ;;  %vm1438_vm7 = vcmp.ge.f32.partialorder %v1417_v57, 0.0 }
 0x981   : > { %v1419_v60 = vmul.f32 0.3275911, %v1418_v59  ;;  %v1432_v62 = vsub.f32 0.0, %v1418_v59 }
 0x983   : > { %v1420_v61 = vadd.f32 1.0, %v1419_v60  ;;  %v1433_v9 = vmul.f32 %v1432_v62, %v1418_v59 }
 0x985   : > { %2008 = vrcp.f32 %v1420_v61  ;;  %v1434_v3 = vmul.f32 1.442695, %v1433_v9 }
 0x987   : > { %2010 = vpow2.f32 %v1434_v3 }
 0x98f   : > { %v2009_v63 = vpop.eup %2008 }
 0x990   : > { %v1423_v0 = vmul.f32 1.0614054, %v2009_v63 }
 0x991   : > { %v2011_v12 = vpop.eup %2010 }
 0x992   : > { %v1781_v2 = vadd.f32 -1.4531521, %v1423_v0 }
 0x994   : > { %v1425_v4 = vmul.f32 %v2009_v63, %v1781_v2 }
 0x996   : > { %v1426_v5 = vadd.f32 1.4214138, %v1425_v4 }
 0x998   : > { %v1427_v6 = vmul.f32 %v2009_v63, %v1426_v5 }
 0x99a   : > { %v1782_v7 = vadd.f32 -0.28449672, %v1427_v6 }
 0x99c   : > { %v1429_v8 = vmul.f32 %v2009_v63, %v1782_v7 }
 0x99e   : > { %v1430_v10 = vadd.f32 0.2548296, %v1429_v8 }
 0x9a0   : > { %v1431_v11 = vmul.f32 %v2009_v63, %v1430_v10 }
 0x9a2   : > { %v1436_v13 = vmul.f32 %v2011_v12, %v1431_v11 }
 0x9a4   : > { %v1437_v14 = vsub.f32 1.0, %v1436_v13 }
 0x9a6   : > { %v1439_v15 = vsub.f32 0.0, %v1437_v14 }
 0x9a8   : > { %v1440_v16 = vsel %vm1438_vm7, %v1437_v14, %v1439_v15 }
 0x9a9   : > { %v1441_v18 = vadd.f32 1.0, %v1440_v16 }
 0x9ab   : > { %v1442_v19 = vmul.f32 %v1441_v18, %v1416_v17 }
 0x9ad   : > { %v1443_v20 = vpack.c.bf16 %v1442_v19, %v1442_v19 }
 0x9af   : > { %1921 = vmatmul.mubr.bf16.vlgmr.msra.gmra.mrb[16].mxu1 %v1443_v20 }
 0xa82   : > { %v1549_v22 = vpop.f32.mrb[16].mxu1 }
 0xa83   : > { %v1550_v23 = vadd.f32 %v1783_v21, %v1549_v22  ;;  %v1922_v24 = vpop.f32.mrb[17].mxu1 }
 0xa84   : > { %v1552_v26 = vpop.f32.mrb[18].mxu1 }
 0xa85   : > { %v1555_v27 = vadd.f32 %v1550_v23, %v2357_v25  ;;  %v1923_v28 = vpop.f32.mrb[19].mxu1 }
 0xa87   : > { %1556 = vst.msk [vmem:[%s2233_s3] sm:$0xff] %vm678_vm1, %v1555_v27 }
 0xa88 PF: > { %s2465_s4 = sld [smem:[#allocation5_spill]]  ;;  %s2466_s29 = sld [smem:[#allocation3_spill]] }
 0xa89   : > { %s2467_s30 = sld [smem:[#allocation4_spill]]  ;;  %s2468_s15 = sld [smem:[#allocation6_spill]] }
 0xa8a   : > { %s2469_s16 = sld [smem:[#allocation7_spill]] }
 0xa8e   : > { %s24_s17 = sadd.s32 1, %s2465_s4  }
 0xa8f   : > { %p21_p8 = scmp.ge.s32.totalorder %s24_s17, 6  }
 0xa91   :  { %23 = sbr.rel (!%p21_p8) target bundleno = 7 (0x7), region = 146 }

// kernel: llm_forward.3
= control target key start
LH: loop header
LB: loop body
LE: loop exit
PB: predicated region body
PF: predicated region fallthrough
CT: control target
= control target key end

     0   :  { %vm21_vm0 = vcmask 254976   ;;  %vm499_vm1 = vcmask 261120   ;;  %s1467_s0 = inlined_call_operand.vmem [shape: f32[2,32], index: 0, kind: input, shape index: {}]   ;;  %s1468_s3 = inlined_call_operand.vmem [shape: bf16[1024,32], index: 3, kind: input, shape index: {}]   ;;  %s1469_s1 = inlined_call_operand.vmem [shape: f32[1,32], index: 1, kind: input, shape index: {}]   ;;  %s1470_s2 = inlined_call_operand.vmem [shape: f32[1,32], index: 2, kind: input, shape index: {}]   ;;  %s1471_s4 = inlined_call_operand.vmem [shape: f32[2,1024], index: 4, kind: output, shape index: {}]  }
   0x1   :  { %v18_v0 = vld [vmem:[%s1467_s0] sm:$0x3]  ;;  %v1088_v7 = vld [vmem:[%s1468_s3 + $0x48] sm:$0xff]   ;;  %v1092_v13 = vld [vmem:[%s1468_s3 + $0x50] sm:$0xff]  }
   0x2   :  { %v22_v1 = vsel %vm21_vm0, %v18_v0, 0.0  ;;  %v1084_v2 = vld [vmem:[%s1468_s3 + $0x40] sm:$0xff]   ;;  %v1089_v9 = vld [vmem:[%s1468_s3 + $0xc8] sm:$0xff]   ;;  %v1093_v15 = vld [vmem:[%s1468_s3 + $0xd0] sm:$0xff]  }
   0x3   :  { %23 = vadd.xlane.f32.xlu0 %v22_v1  ;;  %v1085_v3 = vld [vmem:[%s1468_s3 + $0xc0] sm:$0xff]   ;;  %1051 = vmatprep.subr.msk.bf16.mxu0 %vm499_vm1, %v1084_v2  ;;  %v1090_v10 = vld [vmem:[%s1468_s3 + $0x8] sm:$0xff]   ;;  %v1094_v16 = vld [vmem:[%s1468_s3 + $0x10] sm:$0xff]  }
   0x4   :  { %v1086_v4 = vld [vmem:[%s1468_s3] sm:$0xff]   ;;  %1059 = vmatprep.subr.msk.bf16.mxu1 %vm499_vm1, %v1085_v3  ;;  %v1091_v11 = vld [vmem:[%s1468_s3 + $0x88] sm:$0xff]   ;;  %v507_v12 = vsel %vm499_vm1, %v1090_v10, 0  ;;  %v1095_v17 = vld [vmem:[%s1468_s3 + $0x90] sm:$0xff]   ;;  %v510_v22 = vsel %vm499_vm1, %v1094_v16, 0 }
   0x5   :  { %v1087_v5 = vld [vmem:[%s1468_s3 + $0x80] sm:$0xff]   ;;  %v504_v6 = vsel %vm499_vm1, %v1086_v4, 0  ;;  %v555_v14 = vsel %vm499_vm1, %v1091_v11, 0  ;;  %v1096_v18 = vld [vmem:[%s1468_s3 + $0x58] sm:$0xff]   ;;  %v558_v24 = vsel %vm499_vm1, %v1095_v17, 0  ;;  %v1104_v32 = vld [vmem:[%s1468_s3 + $0x68] sm:$0xff]  }
   0x6   :  { %980 = vmatpush3.bf16.xpose.msra.mxu0 %v504_v6  ;;  %v552_v8 = vsel %vm499_vm1, %v1087_v5, 0  ;;  %v1098_v19 = vld [vmem:[%s1468_s3 + $0x18] sm:$0xff]   ;;  %v1102_v23 = vld [vmem:[%s1468_s3 + $0x20] sm:$0xff]   ;;  %v1105_v33 = vld [vmem:[%s1468_s3 + $0xe8] sm:$0xff]  }
   0x7   :  { %998 = vmatpush3.bf16.xpose.msra.mxu1 %v552_v8  ;;  %1052 = vmatprep.subr.msk.bf16.mxu0 %vm499_vm1, %v1088_v7  ;;  %v1097_v20 = vld [vmem:[%s1468_s3 + $0xd8] sm:$0xff]   ;;  %v1103_v25 = vld [vmem:[%s1468_s3 + $0xa0] sm:$0xff]   ;;  %v513_v26 = vsel %vm499_vm1, %v1098_v19, 0  ;;  %v516_v28 = vsel %vm499_vm1, %v1102_v23, 0  ;;  %v1106_v39 = vld [vmem:[%s1468_s3 + $0x28] sm:$0xff]  }
   0x8   :  { %1060 = vmatprep.subr.msk.bf16.mxu1 %vm499_vm1, %v1089_v9  ;;  %v1099_v21 = vld [vmem:[%s1468_s3 + $0x98] sm:$0xff]   ;;  %v564_v29 = vsel %vm499_vm1, %v1103_v25, 0  ;;  %v1100_v30 = vld [vmem:[%s1468_s3 + $0x60] sm:$0xff]   ;;  %v1107_v40 = vld [vmem:[%s1468_s3 + $0xa8] sm:$0xff]   ;;  %v519_v41 = vsel %vm499_vm1, %v1106_v39, 0 }
   0x9   :  { %v561_v27 = vsel %vm499_vm1, %v1099_v21, 0  ;;  %v1101_v31 = vld [vmem:[%s1468_s3 + $0xe0] sm:$0xff]   ;;  %v567_v42 = vsel %vm499_vm1, %v1107_v40, 0  ;;  %v1108_v43 = vld [vmem:[%s1468_s3 + $0x70] sm:$0xff]   ;;  %v1112_v49 = vld [vmem:[%s1468_s3 + $0x78] sm:$0xff]  }
   0xa   :  { %v1109_v44 = vld [vmem:[%s1468_s3 + $0xf0] sm:$0xff]   ;;  %v1113_v50 = vld [vmem:[%s1468_s3 + $0xf8] sm:$0xff]   ;;  %v1116_v55 = vld [vmem:[%s1468_s3 + $0x140] sm:$0xff]  }
   0xb   :  { %v1110_v45 = vld [vmem:[%s1468_s3 + $0x30] sm:$0xff]   ;;  %v1114_v51 = vld [vmem:[%s1468_s3 + $0x38] sm:$0xff]   ;;  %v1117_v56 = vld [vmem:[%s1468_s3 + $0x1c0] sm:$0xff]  }
   0xc   :  { %v1111_v46 = vld [vmem:[%s1468_s3 + $0xb0] sm:$0xff]   ;;  %v522_v47 = vsel %vm499_vm1, %v1110_v45, 0  ;;  %v1115_v52 = vld [vmem:[%s1468_s3 + $0xb8] sm:$0xff]   ;;  %v525_v53 = vsel %vm499_vm1, %v1114_v51, 0  ;;  %v909_v61 = vld [vmem:[%s1469_s1] ss:$0 sm:$0xff]  ;;  %v872_v51 = vlaneseq }
   0xd   :  { %v570_v48 = vsel %vm499_vm1, %v1111_v46, 0  ;;  %v573_v54 = vsel %vm499_vm1, %v1115_v52, 0  ;;  %v910_v63 = vld [vmem:[%s1470_s2] ss:$0 sm:$0xff]  ;;  %v1120_v7 = vld [vmem:[%s1468_s3 + $0x148] sm:$0xff]   ;;  %v1127_v16 = vld [vmem:[%s1468_s3 + $0x190] sm:$0xff]  }
   0xe   :  { %982 = vmatpush3.bf16.xpose.msra.mxu0 %v507_v12  ;;  %v1118_v1 = vld [vmem:[%s1468_s3 + $0x100] sm:$0xff]   ;;  %v1121_v8 = vld [vmem:[%s1468_s3 + $0x1c8] sm:$0xff]   ;;  %v1128_v19 = vld [vmem:[%s1468_s3 + $0x158] sm:$0xff]  }
   0xf   :  { %1000 = vmatpush3.bf16.xpose.msra.mxu1 %v555_v14  ;;  %1053 = vmatprep.subr.msk.bf16.mxu0 %vm499_vm1, %v1092_v13  ;;  %v1119_v2 = vld [vmem:[%s1468_s3 + $0x180] sm:$0xff]   ;;  %v600_v5 = vsel %vm499_vm1, %v1118_v1, 0  ;;  %v1122_v9 = vld [vmem:[%s1468_s3 + $0x108] sm:$0xff]   ;;  %v1124_v13 = vld [vmem:[%s1468_s3 + $0x150] sm:$0xff]  }
  0x10   :  { %1061 = vmatprep.subr.msk.bf16.mxu1 %vm499_vm1, %v1093_v15  ;;  %v648_v6 = vsel %vm499_vm1, %v1119_v2, 0  ;;  %v1123_v10 = vld [vmem:[%s1468_s3 + $0x188] sm:$0xff]   ;;  %v603_v11 = vsel %vm499_vm1, %v1122_v9, 0  ;;  %v1125_v14 = vld [vmem:[%s1468_s3 + $0x1d0] sm:$0xff]   ;;  %v1130_v21 = vld [vmem:[%s1468_s3 + $0x118] sm:$0xff]  }
  0x11   :  { %v651_v12 = vsel %vm499_vm1, %v1123_v10, 0  ;;  %v1126_v15 = vld [vmem:[%s1468_s3 + $0x110] sm:$0xff]   ;;  %v609_v23 = vsel %vm499_vm1, %v1130_v21, 0  ;;  %v1132_v25 = vld [vmem:[%s1468_s3 + $0x160] sm:$0xff]   ;;  %v1146_v45 = vld [vmem:[%s1468_s3 + $0x138] sm:$0xff]  }
  0x12   :  { %v606_v17 = vsel %vm499_vm1, %v1126_v15, 0  ;;  %v1142_v39 = vld [vmem:[%s1468_s3 + $0x130] sm:$0xff]   ;;  %v1147_v46 = vld [vmem:[%s1468_s3 + $0x1b8] sm:$0xff]  }
  0x13   :  { %v1143_v40 = vld [vmem:[%s1468_s3 + $0x1b0] sm:$0xff]  }
  0x16   :  { %984 = vmatpush3.bf16.xpose.msra.mxu0 %v510_v22  ;;  %v1131_v22 = vld [vmem:[%s1468_s3 + $0x198] sm:$0xff]  }
  0x17   :  { %1002 = vmatpush3.bf16.xpose.msra.mxu1 %v558_v24  ;;  %1054 = vmatprep.subr.msk.bf16.mxu0 %vm499_vm1, %v1096_v18  ;;  %v654_v18 = vsel %vm499_vm1, %v1127_v16, 0  ;;  %v657_v24 = vsel %vm499_vm1, %v1131_v22, 0 }
  0x18   :  { %1062 = vmatprep.subr.msk.bf16.mxu1 %vm499_vm1, %v1097_v20  ;;  %v1129_v20 = vld [vmem:[%s1468_s3 + $0x1d8] sm:$0xff]  }
  0x1e   :  { %986 = vmatpush3.bf16.xpose.msra.mxu0 %v513_v26  ;;  %v1133_v26 = vld [vmem:[%s1468_s3 + $0x1e0] sm:$0xff]  }
  0x1f   :  { %1004 = vmatpush3.bf16.xpose.msra.mxu1 %v561_v27  ;;  %1055 = vmatprep.subr.msk.bf16.mxu0 %vm499_vm1, %v1100_v30  ;;  %v1134_v27 = vld [vmem:[%s1468_s3 + $0x120] sm:$0xff]  }
  0x20   :  { %1063 = vmatprep.subr.msk.bf16.mxu1 %vm499_vm1, %v1101_v31  ;;  %v1136_v31 = vld [vmem:[%s1468_s3 + $0x168] sm:$0xff]  }
  0x26   :  { %988 = vmatpush3.bf16.xpose.msra.mxu0 %v516_v28  ;;  %v1135_v28 = vld [vmem:[%s1468_s3 + $0x1a0] sm:$0xff]  }
  0x27   :  { %1006 = vmatpush3.bf16.xpose.msra.mxu1 %v564_v29  ;;  %1056 = vmatprep.subr.msk.bf16.mxu0 %vm499_vm1, %v1104_v32  ;;  %v612_v29 = vsel %vm499_vm1, %v1134_v27, 0  ;;  %v660_v30 = vsel %vm499_vm1, %v1135_v28, 0  ;;  %v1137_v32 = vld [vmem:[%s1468_s3 + $0x1e8] sm:$0xff]  }
  0x28   :  { %1064 = vmatprep.subr.msk.bf16.mxu1 %vm499_vm1, %v1105_v33  ;;  %v1138_v33 = vld [vmem:[%s1468_s3 + $0x128] sm:$0xff]  }
  0x2e   :  { %990 = vmatpush3.bf16.xpose.msra.mxu0 %v519_v41  ;;  %v618_v41 = vsel %vm499_vm1, %v1142_v39, 0 }
  0x2f   :  { %1008 = vmatpush3.bf16.xpose.msra.mxu1 %v567_v42  ;;  %1057 = vmatprep.subr.msk.bf16.mxu0 %vm499_vm1, %v1108_v43  ;;  %v666_v42 = vsel %vm499_vm1, %v1143_v40, 0  ;;  %v1144_v43 = vld [vmem:[%s1468_s3 + $0x178] sm:$0xff]  }
  0x30   :  { %1065 = vmatprep.subr.msk.bf16.mxu1 %vm499_vm1, %v1109_v44  ;;  %v1145_v44 = vld [vmem:[%s1468_s3 + $0x1f8] sm:$0xff]  }
  0x36   :  { %992 = vmatpush3.bf16.xpose.msra.mxu0 %v522_v47  ;;  %v621_v47 = vsel %vm499_vm1, %v1146_v45, 0 }
  0x37   :  { %1010 = vmatpush3.bf16.xpose.msra.mxu1 %v570_v48  ;;  %1058 = vmatprep.subr.msk.bf16.mxu0 %vm499_vm1, %v1112_v49  ;;  %v669_v48 = vsel %vm499_vm1, %v1147_v46, 0  ;;  %v1150_v49 = vmov 1983009808  }
  0x38   :  { %1066 = vmatprep.subr.msk.bf16.mxu1 %vm499_vm1, %v1113_v50  ;;  %v870_v50 = vunpack.c.l.s4 %v1150_v49 }
  0x3a   :  { %v871_v52 = vunpack.c.0.s8 %v870_v50 }
  0x3e   :  { %994 = vmatpush3.bf16.xpose.msra.mxu0 %v525_v53  ;;  %v873_v53 = vshrl.u32 %v872_v51, 7 }
  0x3f   :  { %1012 = vmatpush3.bf16.xpose.msra.mxu1 %v573_v54  ;;  %1067 = vmatprep.subr.msk.bf16.mxu0 %vm499_vm1, %v1116_v55 }
  0x40   :  { %1075 = vmatprep.subr.msk.bf16.mxu1 %vm499_vm1, %v1117_v56  ;;  %v874_v56 = vsub.s32 %v871_v52, %v873_v53 }
  0x90   :  { %v24_v34 = vpop.xlane.xlu0 %23 }
  0x91   :  { %v26_v35 = vmul.f32 0.03125, %v24_v34  ;;  %v1139_v34 = vld [vmem:[%s1468_s3 + $0x1a8] sm:$0xff]  }
  0x93   :  { %v27_v36 = vsub.f32 %v18_v0, %v26_v35  ;;  %v615_v35 = vsel %vm499_vm1, %v1138_v33, 0 }
  0x95   :  { %v28_v37 = vmul.f32 %v27_v36, %v27_v36 }
  0x97   :  { %v29_v38 = vsel %vm21_vm0, %v28_v37, 0.0  ;;  %v1140_v37 = vld [vmem:[%s1468_s3 + $0x170] sm:$0xff]  }
  0x98   :  { %30 = vadd.xlane.f32.xlu0 %v29_v38  ;;  %v1141_v38 = vld [vmem:[%s1468_s3 + $0x1f0] sm:$0xff]  }
 0x125   :  { %v31_v57 = vpop.xlane.xlu0 %30 }
 0x126   :  { %v32_v58 = vmul.f32 0.03125, %v31_v57 }
 0x128   :  { %v33_v59 = vadd.f32 1e-05, %v32_v58 }
 0x12a   :  { %1148 = vrsqrt.f32 %v33_v59 }
 0x134   :  { %v1149_v60 = vpop.eup %1148 }
 0x135   :  { %v35_v62 = vmul.f32 %v1149_v60, %v27_v36  ;;  %v663_v36 = vsel %vm499_vm1, %v1139_v34, 0 }
 0x137   :  { %v42_v0 = vmul.f32 %v909_v61, %v35_v62 }
 0x139   :  { %v49_v3 = vadd.f32 %v910_v63, %v42_v0 }
 0x13b   :  { %v1329_v4 = vpack.c.bf16 %v49_v3, %v49_v3 }
 0x13d   :  { %995 = vmatprep.mubr.msk.bf16.mxu0 %vm499_vm1, %v1329_v4  ;;  %1013 = vmatprep.mubr.msk.bf16.mxu1 %vm499_vm1, %v1329_v4 }
 0x13e   :  { %996 = vmatmul.mubr.msk.bf16.vlgmr.msra.gmra.mrb[0].mxu0 %vm499_vm1, %v1329_v4  ;;  %1014 = vmatmul.mubr.msk.bf16.vlgmr.msra.gmra.mrb[0].mxu1 %vm499_vm1, %v1329_v4 }
 0x13f   :  { %1016 = vmatpush3.bf16.xpose.msra.mxu0 %v600_v5  ;;  %1034 = vmatpush3.bf16.xpose.msra.mxu1 %v648_v6 }
 0x140   :  { %1031 = vmatprep.mubr.msk.bf16.mxu0 %vm499_vm1, %v1329_v4  ;;  %1049 = vmatprep.mubr.msk.bf16.mxu1 %vm499_vm1, %v1329_v4 }
 0x141   :  { %1068 = vmatprep.subr.msk.bf16.mxu0 %vm499_vm1, %v1120_v7  ;;  %1076 = vmatprep.subr.msk.bf16.mxu1 %vm499_vm1, %v1121_v8 }
 0x147   :  { %1018 = vmatpush3.bf16.xpose.msra.mxu0 %v603_v11  ;;  %1036 = vmatpush3.bf16.xpose.msra.mxu1 %v651_v12 }
 0x148   :  { %1069 = vmatprep.subr.msk.bf16.mxu0 %vm499_vm1, %v1124_v13  ;;  %1077 = vmatprep.subr.msk.bf16.mxu1 %vm499_vm1, %v1125_v14 }
 0x14f   :  { %1020 = vmatpush3.bf16.xpose.msra.mxu0 %v606_v17  ;;  %1038 = vmatpush3.bf16.xpose.msra.mxu1 %v654_v18 }
 0x150   :  { %1070 = vmatprep.subr.msk.bf16.mxu0 %vm499_vm1, %v1128_v19  ;;  %1078 = vmatprep.subr.msk.bf16.mxu1 %vm499_vm1, %v1129_v20 }
 0x157   :  { %1022 = vmatpush3.bf16.xpose.msra.mxu0 %v609_v23  ;;  %1040 = vmatpush3.bf16.xpose.msra.mxu1 %v657_v24 }
 0x158   :  { %1071 = vmatprep.subr.msk.bf16.mxu0 %vm499_vm1, %v1132_v25  ;;  %1079 = vmatprep.subr.msk.bf16.mxu1 %vm499_vm1, %v1133_v26 }
 0x15f   :  { %1024 = vmatpush3.bf16.xpose.msra.mxu0 %v612_v29  ;;  %1042 = vmatpush3.bf16.xpose.msra.mxu1 %v660_v30 }
 0x160   :  { %1072 = vmatprep.subr.msk.bf16.mxu0 %vm499_vm1, %v1136_v31  ;;  %1080 = vmatprep.subr.msk.bf16.mxu1 %vm499_vm1, %v1137_v32 }
 0x167   :  { %1026 = vmatpush3.bf16.xpose.msra.mxu0 %v615_v35  ;;  %1044 = vmatpush3.bf16.xpose.msra.mxu1 %v663_v36 }
 0x168   :  { %1073 = vmatprep.subr.msk.bf16.mxu0 %vm499_vm1, %v1140_v37  ;;  %1081 = vmatprep.subr.msk.bf16.mxu1 %vm499_vm1, %v1141_v38 }
 0x16f   :  { %1028 = vmatpush3.bf16.xpose.msra.mxu0 %v618_v41  ;;  %1046 = vmatpush3.bf16.xpose.msra.mxu1 %v666_v42 }
 0x170   :  { %1074 = vmatprep.subr.msk.bf16.mxu0 %vm499_vm1, %v1144_v43  ;;  %1082 = vmatprep.subr.msk.bf16.mxu1 %vm499_vm1, %v1145_v44 }
 0x177   :  { %1030 = vmatpush3.bf16.xpose.msra.mxu0 %v621_v47  ;;  %1048 = vmatpush3.bf16.xpose.msra.mxu1 %v669_v48 }
 0x17e   :  { %1032 = vmatmul.mubr.msk.bf16.vlgmr.msra.gmra.mrb[4].mxu0 %vm499_vm1, %v1329_v4  ;;  %1050 = vmatmul.mubr.msk.bf16.vlgmr.msra.gmra.mrb[4].mxu1 %vm499_vm1, %v1329_v4 }
 0x211   :  { %v729_v54 = vpop.f32.mrb[0].mxu0  ;;  %v770_v55 = vpop.f32.mrb[0].mxu1 }
 0x212   :  { %v731_v57 = vpop.f32.mrb[1].mxu0  ;;  %v772_v58 = vpop.f32.mrb[1].mxu1 }
 0x213   :  { %v867_v59 = vcombine.low %v729_v54, %v731_v57  ;;  %v868_v60 = vcombine.low %v770_v55, %v772_v58  ;;  %v733_v61 = vpop.f32.mrb[2].mxu0  ;;  %v774_v62 = vpop.f32.mrb[2].mxu1 }
 0x214   :  { %v734_v63 = vpop.f32.mrb[3].mxu0  ;;  %v775_v0 = vpop.f32.mrb[3].mxu1 }
 0x215   :  { %v875_v1 = vrot.slane %v867_v59, %v874_v56  ;;  %v882_v2 = vrot.slane %v868_v60, %v874_v56 }
 0x217   :  { %v883_v3 = vcombine.low %v875_v1, %v882_v2 }
 0x219   :  { %903 = vst [vmem:[%s1471_s4] sm:$0xff] %v883_v3 }
 0x251   :  { %v811_v4 = vpop.f32.mrb[4].mxu0  ;;  %v852_v5 = vpop.f32.mrb[4].mxu1 }
 0x252   :  { %v813_v6 = vpop.f32.mrb[5].mxu0  ;;  %v854_v7 = vpop.f32.mrb[5].mxu1 }
 0x253   :  { %v884_v8 = vcombine.low %v811_v4, %v813_v6  ;;  %v885_v9 = vcombine.low %v852_v5, %v854_v7  ;;  %v815_v10 = vpop.f32.mrb[6].mxu0  ;;  %v856_v11 = vpop.f32.mrb[6].mxu1 }
 0x254   :  { %v816_v12 = vpop.f32.mrb[7].mxu0  ;;  %v857_v13 = vpop.f32.mrb[7].mxu1 }
 0x255   :  { %v892_v14 = vrot.slane %v884_v8, %v874_v56  ;;  %v899_v15 = vrot.slane %v885_v9, %v874_v56 }
 0x257   :  { %v900_v16 = vcombine.low %v892_v14, %v899_v15 }
 0x259   :  { %904 = vst [vmem:[%s1471_s4 + $0x8] sm:$0xff] %v900_v16 }

</bundles_post_ra>
